<compile_context>
chip_gen: v5e
topology: v5e:2x2
jax: 0.10.0
libtpu: 0.0.40
codegen_flags: <defaults>
</compile_context>

<pallas_src>
import functools

import jax
import jax.numpy as jnp
from jax.experimental import pallas as pl
from jax.experimental.pallas import tpu as pltpu

NEG_INF = -1e30


# ----------------------------- Pallas kernel -------------------------------

def _fused_kernel(ec_ref,                                   # SMEM [3, H] edge coeffs
                  x_ref, mask1_ref, ea1_ref, mask2_ref, ea2_ref,
                  wcat1_ref, b1_ref, wcat2_ref, b2_ref, wcat3_ref, b3_ref,
                  pool_ref, fc1w_ref, fc1b_ref, fc2w_ref, fc2b_ref,
                  o_ref, *, heads, out_per_head):
    hc = heads * out_per_head

    def gat(xin, add_mask, ea, wcat_ref, b_ref, layer):
        # One fused MXU projection: [x@W | x@(W@a_src) | x@(W@a_dst)]  -> [N, HC+2H]
        hw = jnp.dot(xin, wcat_ref[...], preferred_element_type=jnp.float32)
        h = hw[:, :hc]                                     # [N, HC] projected features
        a_src_t = hw[:, hc:hc + heads].T                   # [H, N] source attention term
        a_dst = hw[:, hc + heads:]                         # [N, H] destination attention term
        outs = []
        for hd in range(heads):
            # raw attention logits for head hd; edge attrs scaled in-kernel (SMEM scalar)
            s = (a_dst[:, hd:hd + 1] + a_src_t[hd:hd + 1, :]
                 + ec_ref[layer, hd] * ea)                 # [N, N]
            s = jnp.where(s > 0, s, 0.2 * s)               # LeakyReLU(0.2)
            s = s + add_mask                               # single masking mechanism (-1e30)
            m = jnp.max(s, axis=1, keepdims=True)
            p = jnp.exp(s - m)
            den = jnp.sum(p, axis=1, keepdims=True)        # >= 1 when dst has >= 1 in-edge
            p = p * pl.reciprocal(den, approx=True)        # EUP reciprocal, off the VALU
            outs.append(jnp.dot(p, h[:, hd * out_per_head:(hd + 1) * out_per_head],
                                preferred_element_type=jnp.float32))
        out = jnp.concatenate(outs, axis=1) + b_ref[...]   # bias added once, full width
        return jnp.maximum(out, 0.0)                       # fused ReLU

    mask2 = mask2_ref[...]
    ea2 = ea2_ref[...]

    h = gat(x_ref[...], mask1_ref[...], ea1_ref[...], wcat1_ref, b1_ref, 0)
    h = gat(h, mask2, ea2, wcat2_ref, b2_ref, 1)
    h = gat(h, mask2, ea2, wcat3_ref, b3_ref, 2)

    # global_mean_pool as a dense [G, N] pooling matmul, then the gating MLP
    g = jnp.dot(pool_ref[...], h, preferred_element_type=jnp.float32)     # [G, HC]
    z = jnp.dot(g, fc1w_ref[...], preferred_element_type=jnp.float32) + fc1b_ref[...]
    z = jnp.maximum(z, 0.0)
    o_ref[...] = jnp.dot(z, fc2w_ref[...], preferred_element_type=jnp.float32) + fc2b_ref[...]


def _vspec(shape):
    nd = len(shape)
    return pl.BlockSpec(shape, lambda i, nd=nd: (0,) * nd)


def expert_gate_fused(ec_all, x, mask1, ea1, mask2, ea2,
                      wcat1, b1, wcat2, b2, wcat3, b3,
                      pool, fc1_w, fc1_b, fc2_w, fc2_b, *, heads):
    hc = b1.shape[1]
    c = hc // heads
    g = pool.shape[0]
    e = fc2_w.shape[1]
    kernel = functools.partial(_fused_kernel, heads=heads, out_per_head=c)
    vmem_inputs = [x, mask1, ea1, mask2, ea2, wcat1, b1, wcat2, b2, wcat3, b3,
                   pool, fc1_w, fc1_b, fc2_w, fc2_b]
    in_specs = ([pl.BlockSpec(memory_space=pltpu.MemorySpace.SMEM)]
                + [_vspec(a.shape) for a in vmem_inputs])
    return pl.pallas_call(
        kernel,
        out_shape=jax.ShapeDtypeStruct((g, e), jnp.float32),
        grid=(1,),
        in_specs=in_specs,
        out_specs=_vspec((g, e)),
        compiler_params=pltpu.CompilerParams(dimension_semantics=("arbitrary",)),
    )(ec_all, *vmem_inputs)


# ----------------------------- JAX glue -------------------------------------

def make_gat_params(key, fin, hidden, heads):
    c = hidden
    hc = heads * c
    ks = jax.random.split(key, 6)
    w = 0.2 * jax.random.normal(ks[0], (fin, hc), jnp.float32)        # lin_src == lin_dst
    att_src = 0.2 * jax.random.normal(ks[1], (heads, c), jnp.float32)
    att_dst = 0.2 * jax.random.normal(ks[2], (heads, c), jnp.float32)
    w_edge = 0.2 * jax.random.normal(ks[3], (hc,), jnp.float32)       # Linear(1, H*C), no bias
    att_edge = 0.2 * jax.random.normal(ks[4], (heads, c), jnp.float32)
    bias = 0.02 * jax.random.normal(ks[5], (1, hc), jnp.float32)
    eye = jnp.eye(heads, dtype=jnp.float32)
    # asrc_mat[h*C+c, h'] = att_src[h', c] iff h == h'  -> per-head alpha via one matmul
    asrc_mat = (att_src[:, :, None] * eye[:, None, :]).reshape(hc, heads)
    adst_mat = (att_dst[:, :, None] * eye[:, None, :]).reshape(hc, heads)
    # Fold attention projections into the feature projection (one MXU op in-kernel).
    wcat = jnp.concatenate([w, w @ asrc_mat, w @ adst_mat], axis=1)    # [fin, HC+2H]
    edge_coef = (w_edge.reshape(heads, c) * att_edge).sum(axis=1)      # [H]
    return dict(wcat=wcat, edge_coef=edge_coef, bias=bias)


def densify(edge_index, edge_attr, n):
    src, dst = edge_index[0], edge_index[1]
    adj = jnp.zeros((n, n), jnp.float32).at[dst, src].set(1.0)
    eattr = jnp.zeros((n, n), jnp.float32).at[dst, src].set(edge_attr[:, 0])
    return adj, eattr


def add_self_loops_mean(adj, eattr):
    # fill_value='mean': self-loop edge attr = mean of incoming edge attrs (per dst)
    n = adj.shape[0]
    eye = jnp.eye(n, dtype=jnp.float32)
    deg = adj.sum(axis=1)
    mean_in = jnp.where(deg > 0, (adj * eattr).sum(axis=1) / jnp.maximum(deg, 1.0), 0.0)
    adj_sl = jnp.maximum(adj, eye)
    eattr_sl = eattr * (1.0 - eye) + jnp.diag(mean_in)
    return adj_sl, eattr_sl


def expert_gate_forward(params, x, edge_index, edge_attr, batch, num_graphs, heads=8):
    n = x.shape[0]
    adj1, ea1 = densify(edge_index, edge_attr, n)           # conv1: add_self_loops=False
    adj2, ea2 = add_self_loops_mean(adj1, ea1)              # conv2/3: self loops, 'mean' fill
    mask1 = jnp.where(adj1 > 0, 0.0, NEG_INF).astype(jnp.float32)
    mask2 = jnp.where(adj2 > 0, 0.0, NEG_INF).astype(jnp.float32)

    # global_mean_pool as a dense [G, N] pooling matrix (applied inside the kernel)
    onehot = (batch[:, None] == jnp.arange(num_graphs)[None, :]).astype(jnp.float32)
    counts = jnp.maximum(onehot.sum(axis=0), 1.0)
    pool = (onehot / counts).T                              # [G, N]

    ec_all = jnp.stack([params["conv1"]["edge_coef"],
                        params["conv2"]["edge_coef"],
                        params["conv3"]["edge_coef"]], axis=0)   # [3, H] -> SMEM

    return expert_gate_fused(
        ec_all, x, mask1, ea1, mask2, ea2,
        params["conv1"]["wcat"], params["conv1"]["bias"],
        params["conv2"]["wcat"], params["conv2"]["bias"],
        params["conv3"]["wcat"], params["conv3"]["bias"],
        pool, params["fc1_w"], params["fc1_b"], params["fc2_w"], params["fc2_b"],
        heads=heads)


# ----------------------------- main ------------------------------------------

if __name__ == "__main__":
    in_channels = 6
    hidden_channels = 8
    heads = 8
    num_experts = 4
    num_nodes = 8
    num_graphs = 2

    key = jax.random.PRNGKey(0)
    k_x, k_e, k1, k2, k3, k4, k5 = jax.random.split(key, 7)

    x = jax.random.normal(k_x, (num_nodes, in_channels), jnp.float32)
    # two 4-node graphs, directed edges, no self loops
    src = jnp.array([0, 1, 2, 3, 1, 2, 4, 5, 6, 7, 5, 6], dtype=jnp.int32)
    dst = jnp.array([1, 2, 3, 0, 0, 1, 5, 6, 7, 4, 4, 5], dtype=jnp.int32)
    edge_index = jnp.stack([src, dst], axis=0)
    edge_attr = jax.random.uniform(k_e, (edge_index.shape[1], 1), jnp.float32)
    batch = jnp.array([0, 0, 0, 0, 1, 1, 1, 1], dtype=jnp.int32)

    hc = hidden_channels * heads
    params = {
        "conv1": make_gat_params(k1, in_channels, hidden_channels, heads),
        "conv2": make_gat_params(k2, hc, hidden_channels, heads),
        "conv3": make_gat_params(k3, hc, hidden_channels, heads),
        "fc1_w": 0.1 * jax.random.normal(k4, (hc, hidden_channels * 4), jnp.float32),
        "fc1_b": jnp.zeros((1, hidden_channels * 4), jnp.float32),
        "fc2_w": 0.1 * jax.random.normal(k5, (hidden_channels * 4, num_experts), jnp.float32),
        "fc2_b": jnp.zeros((1, num_experts), jnp.float32),
    }

    logits = expert_gate_forward(params, x, edge_index, edge_attr, batch, num_graphs,
                                 heads=heads)
    logits = jax.block_until_ready(logits)
    assert logits.shape == (num_graphs, num_experts)
    assert bool(jnp.all(jnp.isfinite(logits)))
    print("KERNEL_OK")
</pallas_src>

<mosaic_0001>
module attributes {stable_mosaic.version = 11 : i64} {
  func.func @_fused_kernel(%arg0: i32, %arg1: memref<3x8xf32, #tpu.memory_space<smem>>, %arg2: memref<8x6xf32, #tpu.memory_space<vmem>>, %arg3: memref<8x8xf32, #tpu.memory_space<vmem>>, %arg4: memref<8x8xf32, #tpu.memory_space<vmem>>, %arg5: memref<8x8xf32, #tpu.memory_space<vmem>>, %arg6: memref<8x8xf32, #tpu.memory_space<vmem>>, %arg7: memref<6x80xf32, #tpu.memory_space<vmem>>, %arg8: memref<1x64xf32, #tpu.memory_space<vmem>>, %arg9: memref<64x80xf32, #tpu.memory_space<vmem>>, %arg10: memref<1x64xf32, #tpu.memory_space<vmem>>, %arg11: memref<64x80xf32, #tpu.memory_space<vmem>>, %arg12: memref<1x64xf32, #tpu.memory_space<vmem>>, %arg13: memref<2x8xf32, #tpu.memory_space<vmem>>, %arg14: memref<64x32xf32, #tpu.memory_space<vmem>>, %arg15: memref<1x32xf32, #tpu.memory_space<vmem>>, %arg16: memref<32x4xf32, #tpu.memory_space<vmem>>, %arg17: memref<1x4xf32, #tpu.memory_space<vmem>>, %arg18: memref<2x4xf32, #tpu.memory_space<vmem>>) attributes {dimension_semantics = [#tpu.dimension_semantics<arbitrary>], iteration_bounds = array<i64: 1>, scalar_prefetch = 0 : i64, scratch_operands = 0 : i64, tpu.core_type = #tpu.core_type<tc>, window_params = [{transform_indices = @transform_0, window_bounds = array<i64: 3, 8>}, {pipeline_mode = #tpu.pipeline_mode<synchronous>, transform_indices = @transform_1, window_bounds = array<i64: 8, 6>}, {pipeline_mode = #tpu.pipeline_mode<synchronous>, transform_indices = @transform_2, window_bounds = array<i64: 8, 8>}, {pipeline_mode = #tpu.pipeline_mode<synchronous>, transform_indices = @transform_3, window_bounds = array<i64: 8, 8>}, {pipeline_mode = #tpu.pipeline_mode<synchronous>, transform_indices = @transform_4, window_bounds = array<i64: 8, 8>}, {pipeline_mode = #tpu.pipeline_mode<synchronous>, transform_indices = @transform_5, window_bounds = array<i64: 8, 8>}, {pipeline_mode = #tpu.pipeline_mode<synchronous>, transform_indices = @transform_6, window_bounds = array<i64: 6, 80>}, {pipeline_mode = #tpu.pipeline_mode<synchronous>, transform_indices = @transform_7, window_bounds = array<i64: 1, 64>}, {pipeline_mode = #tpu.pipeline_mode<synchronous>, transform_indices = @transform_8, window_bounds = array<i64: 64, 80>}, {pipeline_mode = #tpu.pipeline_mode<synchronous>, transform_indices = @transform_9, window_bounds = array<i64: 1, 64>}, {pipeline_mode = #tpu.pipeline_mode<synchronous>, transform_indices = @transform_10, window_bounds = array<i64: 64, 80>}, {pipeline_mode = #tpu.pipeline_mode<synchronous>, transform_indices = @transform_11, window_bounds = array<i64: 1, 64>}, {pipeline_mode = #tpu.pipeline_mode<synchronous>, transform_indices = @transform_12, window_bounds = array<i64: 2, 8>}, {pipeline_mode = #tpu.pipeline_mode<synchronous>, transform_indices = @transform_13, window_bounds = array<i64: 64, 32>}, {pipeline_mode = #tpu.pipeline_mode<synchronous>, transform_indices = @transform_14, window_bounds = array<i64: 1, 32>}, {pipeline_mode = #tpu.pipeline_mode<synchronous>, transform_indices = @transform_15, window_bounds = array<i64: 32, 4>}, {pipeline_mode = #tpu.pipeline_mode<synchronous>, transform_indices = @transform_16, window_bounds = array<i64: 1, 4>}, {pipeline_mode = #tpu.pipeline_mode<synchronous>, transform_indices = @transform_17, window_bounds = array<i64: 2, 4>}]} {
    %c0 = arith.constant 0 : index
    %c0_0 = arith.constant 0 : index
    %0 = vector.load %arg5[%c0, %c0_0] : memref<8x8xf32, #tpu.memory_space<vmem>>, vector<8x8xf32>
    %c0_1 = arith.constant 0 : index
    %c0_2 = arith.constant 0 : index
    %1 = vector.load %arg6[%c0_1, %c0_2] : memref<8x8xf32, #tpu.memory_space<vmem>>, vector<8x8xf32>
    %c0_3 = arith.constant 0 : index
    %c0_4 = arith.constant 0 : index
    %2 = vector.load %arg2[%c0_3, %c0_4] : memref<8x6xf32, #tpu.memory_space<vmem>>, vector<8x6xf32>
    %c0_5 = arith.constant 0 : index
    %c0_6 = arith.constant 0 : index
    %3 = vector.load %arg3[%c0_5, %c0_6] : memref<8x8xf32, #tpu.memory_space<vmem>>, vector<8x8xf32>
    %c0_7 = arith.constant 0 : index
    %c0_8 = arith.constant 0 : index
    %4 = vector.load %arg4[%c0_7, %c0_8] : memref<8x8xf32, #tpu.memory_space<vmem>>, vector<8x8xf32>
    %c0_9 = arith.constant 0 : index
    %c0_10 = arith.constant 0 : index
    %5 = vector.load %arg7[%c0_9, %c0_10] : memref<6x80xf32, #tpu.memory_space<vmem>>, vector<6x80xf32>
    %cst = arith.constant dense<0.000000e+00> : vector<8x80xf32>
    %6 = tpu.matmul %2, %5, %cst {dimension_numbers = #tpu.dot_dimension_numbers<[1], [0], [0], [1], [0, 0, 1, 1], [], []>} : vector<8x6xf32>, vector<6x80xf32>, vector<8x80xf32> -> vector<8x80xf32>
    %7 = vector.extract_strided_slice %6 {offsets = [0, 0], sizes = [8, 64], strides = [1, 1]} : vector<8x80xf32> to vector<8x64xf32>
    %8 = vector.extract_strided_slice %6 {offsets = [0, 64], sizes = [8, 8], strides = [1, 1]} : vector<8x80xf32> to vector<8x8xf32>
    %9 = tpu.transpose %8, [1, 0] : vector<8x8xf32> -> vector<8x8xf32>
    %10 = vector.extract_strided_slice %6 {offsets = [0, 72], sizes = [8, 8], strides = [1, 1]} : vector<8x80xf32> to vector<8x8xf32>
    %11 = vector.extract_strided_slice %10 {offsets = [0, 0], sizes = [8, 1], strides = [1, 1]} : vector<8x8xf32> to vector<8x1xf32>
    %12 = vector.extract_strided_slice %9 {offsets = [0, 0], sizes = [1, 8], strides = [1, 1]} : vector<8x8xf32> to vector<1x8xf32>
    %13 = vector.broadcast %11 : vector<8x1xf32> to vector<8x8xf32>
    %14 = vector.broadcast %12 : vector<1x8xf32> to vector<8x8xf32>
    %15 = arith.addf %13, %14 : vector<8x8xf32>
    %c0_11 = arith.constant 0 : index
    %c0_12 = arith.constant 0 : index
    %16 = memref.load %arg1[%c0_11, %c0_12] : memref<3x8xf32, #tpu.memory_space<smem>>
    %17 = vector.broadcast %16 : f32 to vector<8x8xf32>
    %18 = arith.mulf %17, %4 : vector<8x8xf32>
    %19 = arith.addf %15, %18 : vector<8x8xf32>
    %cst_13 = arith.constant 0.000000e+00 : f32
    %20 = vector.broadcast %cst_13 : f32 to vector<8x8xf32>
    %21 = arith.cmpf ogt, %19, %20 : vector<8x8xf32>
    %cst_14 = arith.constant 2.000000e-01 : f32
    %22 = vector.broadcast %cst_14 : f32 to vector<8x8xf32>
    %23 = arith.mulf %22, %19 : vector<8x8xf32>
    %24 = arith.select %21, %19, %23 : vector<8x8xi1>, vector<8x8xf32>
    %25 = arith.addf %24, %3 : vector<8x8xf32>
    %cst_15 = arith.constant dense<0xFF800000> : vector<8xf32>
    %26 = vector.multi_reduction <maximumf>, %25, %cst_15 [1] : vector<8x8xf32> to vector<8xf32>
    %27 = vector.shape_cast %26 : vector<8xf32> to vector<8x1xf32>
    %28 = vector.broadcast %27 : vector<8x1xf32> to vector<8x8xf32>
    %29 = arith.subf %25, %28 : vector<8x8xf32>
    %30 = math.exp %29 : vector<8x8xf32>
    %cst_16 = arith.constant dense<0.000000e+00> : vector<8xf32>
    %31 = vector.multi_reduction <add>, %30, %cst_16 [1] : vector<8x8xf32> to vector<8xf32>
    %32 = vector.shape_cast %31 : vector<8xf32> to vector<8x1xf32>
    %33 = tpu.reciprocal %32 {approx = true} : vector<8x1xf32> -> vector<8x1xf32>
    %34 = vector.broadcast %33 : vector<8x1xf32> to vector<8x8xf32>
    %35 = arith.mulf %30, %34 : vector<8x8xf32>
    %36 = vector.extract_strided_slice %7 {offsets = [0, 0], sizes = [8, 8], strides = [1, 1]} : vector<8x64xf32> to vector<8x8xf32>
    %cst_17 = arith.constant dense<0.000000e+00> : vector<8x8xf32>
    %37 = tpu.matmul %35, %36, %cst_17 {dimension_numbers = #tpu.dot_dimension_numbers<[1], [0], [0], [1], [0, 0, 1, 1], [], []>} : vector<8x8xf32>, vector<8x8xf32>, vector<8x8xf32> -> vector<8x8xf32>
    %38 = vector.extract_strided_slice %10 {offsets = [0, 1], sizes = [8, 1], strides = [1, 1]} : vector<8x8xf32> to vector<8x1xf32>
    %39 = vector.extract_strided_slice %9 {offsets = [1, 0], sizes = [1, 8], strides = [1, 1]} : vector<8x8xf32> to vector<1x8xf32>
    %40 = vector.broadcast %38 : vector<8x1xf32> to vector<8x8xf32>
    %41 = vector.broadcast %39 : vector<1x8xf32> to vector<8x8xf32>
    %42 = arith.addf %40, %41 : vector<8x8xf32>
    %c0_18 = arith.constant 0 : index
    %c1 = arith.constant 1 : index
    %43 = memref.load %arg1[%c0_18, %c1] : memref<3x8xf32, #tpu.memory_space<smem>>
    %44 = vector.broadcast %43 : f32 to vector<8x8xf32>
    %45 = arith.mulf %44, %4 : vector<8x8xf32>
    %46 = arith.addf %42, %45 : vector<8x8xf32>
    %cst_19 = arith.constant 0.000000e+00 : f32
    %47 = vector.broadcast %cst_19 : f32 to vector<8x8xf32>
    %48 = arith.cmpf ogt, %46, %47 : vector<8x8xf32>
    %cst_20 = arith.constant 2.000000e-01 : f32
    %49 = vector.broadcast %cst_20 : f32 to vector<8x8xf32>
    %50 = arith.mulf %49, %46 : vector<8x8xf32>
    %51 = arith.select %48, %46, %50 : vector<8x8xi1>, vector<8x8xf32>
    %52 = arith.addf %51, %3 : vector<8x8xf32>
    %cst_21 = arith.constant dense<0xFF800000> : vector<8xf32>
    %53 = vector.multi_reduction <maximumf>, %52, %cst_21 [1] : vector<8x8xf32> to vector<8xf32>
    %54 = vector.shape_cast %53 : vector<8xf32> to vector<8x1xf32>
    %55 = vector.broadcast %54 : vector<8x1xf32> to vector<8x8xf32>
    %56 = arith.subf %52, %55 : vector<8x8xf32>
    %57 = math.exp %56 : vector<8x8xf32>
    %cst_22 = arith.constant dense<0.000000e+00> : vector<8xf32>
    %58 = vector.multi_reduction <add>, %57, %cst_22 [1] : vector<8x8xf32> to vector<8xf32>
    %59 = vector.shape_cast %58 : vector<8xf32> to vector<8x1xf32>
    %60 = tpu.reciprocal %59 {approx = true} : vector<8x1xf32> -> vector<8x1xf32>
    %61 = vector.broadcast %60 : vector<8x1xf32> to vector<8x8xf32>
    %62 = arith.mulf %57, %61 : vector<8x8xf32>
    %63 = vector.extract_strided_slice %7 {offsets = [0, 8], sizes = [8, 8], strides = [1, 1]} : vector<8x64xf32> to vector<8x8xf32>
    %cst_23 = arith.constant dense<0.000000e+00> : vector<8x8xf32>
    %64 = tpu.matmul %62, %63, %cst_23 {dimension_numbers = #tpu.dot_dimension_numbers<[1], [0], [0], [1], [0, 0, 1, 1], [], []>} : vector<8x8xf32>, vector<8x8xf32>, vector<8x8xf32> -> vector<8x8xf32>
    %65 = vector.extract_strided_slice %10 {offsets = [0, 2], sizes = [8, 1], strides = [1, 1]} : vector<8x8xf32> to vector<8x1xf32>
    %66 = vector.extract_strided_slice %9 {offsets = [2, 0], sizes = [1, 8], strides = [1, 1]} : vector<8x8xf32> to vector<1x8xf32>
    %67 = vector.broadcast %65 : vector<8x1xf32> to vector<8x8xf32>
    %68 = vector.broadcast %66 : vector<1x8xf32> to vector<8x8xf32>
    %69 = arith.addf %67, %68 : vector<8x8xf32>
    %c0_24 = arith.constant 0 : index
    %c2 = arith.constant 2 : index
    %70 = memref.load %arg1[%c0_24, %c2] : memref<3x8xf32, #tpu.memory_space<smem>>
    %71 = vector.broadcast %70 : f32 to vector<8x8xf32>
    %72 = arith.mulf %71, %4 : vector<8x8xf32>
    %73 = arith.addf %69, %72 : vector<8x8xf32>
    %cst_25 = arith.constant 0.000000e+00 : f32
    %74 = vector.broadcast %cst_25 : f32 to vector<8x8xf32>
    %75 = arith.cmpf ogt, %73, %74 : vector<8x8xf32>
    %cst_26 = arith.constant 2.000000e-01 : f32
    %76 = vector.broadcast %cst_26 : f32 to vector<8x8xf32>
    %77 = arith.mulf %76, %73 : vector<8x8xf32>
    %78 = arith.select %75, %73, %77 : vector<8x8xi1>, vector<8x8xf32>
    %79 = arith.addf %78, %3 : vector<8x8xf32>
    %cst_27 = arith.constant dense<0xFF800000> : vector<8xf32>
    %80 = vector.multi_reduction <maximumf>, %79, %cst_27 [1] : vector<8x8xf32> to vector<8xf32>
    %81 = vector.shape_cast %80 : vector<8xf32> to vector<8x1xf32>
    %82 = vector.broadcast %81 : vector<8x1xf32> to vector<8x8xf32>
    %83 = arith.subf %79, %82 : vector<8x8xf32>
    %84 = math.exp %83 : vector<8x8xf32>
    %cst_28 = arith.constant dense<0.000000e+00> : vector<8xf32>
    %85 = vector.multi_reduction <add>, %84, %cst_28 [1] : vector<8x8xf32> to vector<8xf32>
    %86 = vector.shape_cast %85 : vector<8xf32> to vector<8x1xf32>
    %87 = tpu.reciprocal %86 {approx = true} : vector<8x1xf32> -> vector<8x1xf32>
    %88 = vector.broadcast %87 : vector<8x1xf32> to vector<8x8xf32>
    %89 = arith.mulf %84, %88 : vector<8x8xf32>
    %90 = vector.extract_strided_slice %7 {offsets = [0, 16], sizes = [8, 8], strides = [1, 1]} : vector<8x64xf32> to vector<8x8xf32>
    %cst_29 = arith.constant dense<0.000000e+00> : vector<8x8xf32>
    %91 = tpu.matmul %89, %90, %cst_29 {dimension_numbers = #tpu.dot_dimension_numbers<[1], [0], [0], [1], [0, 0, 1, 1], [], []>} : vector<8x8xf32>, vector<8x8xf32>, vector<8x8xf32> -> vector<8x8xf32>
    %92 = vector.extract_strided_slice %10 {offsets = [0, 3], sizes = [8, 1], strides = [1, 1]} : vector<8x8xf32> to vector<8x1xf32>
    %93 = vector.extract_strided_slice %9 {offsets = [3, 0], sizes = [1, 8], strides = [1, 1]} : vector<8x8xf32> to vector<1x8xf32>
    %94 = vector.broadcast %92 : vector<8x1xf32> to vector<8x8xf32>
    %95 = vector.broadcast %93 : vector<1x8xf32> to vector<8x8xf32>
    %96 = arith.addf %94, %95 : vector<8x8xf32>
    %c0_30 = arith.constant 0 : index
    %c3 = arith.constant 3 : index
    %97 = memref.load %arg1[%c0_30, %c3] : memref<3x8xf32, #tpu.memory_space<smem>>
    %98 = vector.broadcast %97 : f32 to vector<8x8xf32>
    %99 = arith.mulf %98, %4 : vector<8x8xf32>
    %100 = arith.addf %96, %99 : vector<8x8xf32>
    %cst_31 = arith.constant 0.000000e+00 : f32
    %101 = vector.broadcast %cst_31 : f32 to vector<8x8xf32>
    %102 = arith.cmpf ogt, %100, %101 : vector<8x8xf32>
    %cst_32 = arith.constant 2.000000e-01 : f32
    %103 = vector.broadcast %cst_32 : f32 to vector<8x8xf32>
    %104 = arith.mulf %103, %100 : vector<8x8xf32>
    %105 = arith.select %102, %100, %104 : vector<8x8xi1>, vector<8x8xf32>
    %106 = arith.addf %105, %3 : vector<8x8xf32>
    %cst_33 = arith.constant dense<0xFF800000> : vector<8xf32>
    %107 = vector.multi_reduction <maximumf>, %106, %cst_33 [1] : vector<8x8xf32> to vector<8xf32>
    %108 = vector.shape_cast %107 : vector<8xf32> to vector<8x1xf32>
    %109 = vector.broadcast %108 : vector<8x1xf32> to vector<8x8xf32>
    %110 = arith.subf %106, %109 : vector<8x8xf32>
    %111 = math.exp %110 : vector<8x8xf32>
    %cst_34 = arith.constant dense<0.000000e+00> : vector<8xf32>
    %112 = vector.multi_reduction <add>, %111, %cst_34 [1] : vector<8x8xf32> to vector<8xf32>
    %113 = vector.shape_cast %112 : vector<8xf32> to vector<8x1xf32>
    %114 = tpu.reciprocal %113 {approx = true} : vector<8x1xf32> -> vector<8x1xf32>
    %115 = vector.broadcast %114 : vector<8x1xf32> to vector<8x8xf32>
    %116 = arith.mulf %111, %115 : vector<8x8xf32>
    %117 = vector.extract_strided_slice %7 {offsets = [0, 24], sizes = [8, 8], strides = [1, 1]} : vector<8x64xf32> to vector<8x8xf32>
    %cst_35 = arith.constant dense<0.000000e+00> : vector<8x8xf32>
    %118 = tpu.matmul %116, %117, %cst_35 {dimension_numbers = #tpu.dot_dimension_numbers<[1], [0], [0], [1], [0, 0, 1, 1], [], []>} : vector<8x8xf32>, vector<8x8xf32>, vector<8x8xf32> -> vector<8x8xf32>
    %119 = vector.extract_strided_slice %10 {offsets = [0, 4], sizes = [8, 1], strides = [1, 1]} : vector<8x8xf32> to vector<8x1xf32>
    %120 = vector.extract_strided_slice %9 {offsets = [4, 0], sizes = [1, 8], strides = [1, 1]} : vector<8x8xf32> to vector<1x8xf32>
    %121 = vector.broadcast %119 : vector<8x1xf32> to vector<8x8xf32>
    %122 = vector.broadcast %120 : vector<1x8xf32> to vector<8x8xf32>
    %123 = arith.addf %121, %122 : vector<8x8xf32>
    %c0_36 = arith.constant 0 : index
    %c4 = arith.constant 4 : index
    %124 = memref.load %arg1[%c0_36, %c4] : memref<3x8xf32, #tpu.memory_space<smem>>
    %125 = vector.broadcast %124 : f32 to vector<8x8xf32>
    %126 = arith.mulf %125, %4 : vector<8x8xf32>
    %127 = arith.addf %123, %126 : vector<8x8xf32>
    %cst_37 = arith.constant 0.000000e+00 : f32
    %128 = vector.broadcast %cst_37 : f32 to vector<8x8xf32>
    %129 = arith.cmpf ogt, %127, %128 : vector<8x8xf32>
    %cst_38 = arith.constant 2.000000e-01 : f32
    %130 = vector.broadcast %cst_38 : f32 to vector<8x8xf32>
    %131 = arith.mulf %130, %127 : vector<8x8xf32>
    %132 = arith.select %129, %127, %131 : vector<8x8xi1>, vector<8x8xf32>
    %133 = arith.addf %132, %3 : vector<8x8xf32>
    %cst_39 = arith.constant dense<0xFF800000> : vector<8xf32>
    %134 = vector.multi_reduction <maximumf>, %133, %cst_39 [1] : vector<8x8xf32> to vector<8xf32>
    %135 = vector.shape_cast %134 : vector<8xf32> to vector<8x1xf32>
    %136 = vector.broadcast %135 : vector<8x1xf32> to vector<8x8xf32>
    %137 = arith.subf %133, %136 : vector<8x8xf32>
    %138 = math.exp %137 : vector<8x8xf32>
    %cst_40 = arith.constant dense<0.000000e+00> : vector<8xf32>
    %139 = vector.multi_reduction <add>, %138, %cst_40 [1] : vector<8x8xf32> to vector<8xf32>
    %140 = vector.shape_cast %139 : vector<8xf32> to vector<8x1xf32>
    %141 = tpu.reciprocal %140 {approx = true} : vector<8x1xf32> -> vector<8x1xf32>
    %142 = vector.broadcast %141 : vector<8x1xf32> to vector<8x8xf32>
    %143 = arith.mulf %138, %142 : vector<8x8xf32>
    %144 = vector.extract_strided_slice %7 {offsets = [0, 32], sizes = [8, 8], strides = [1, 1]} : vector<8x64xf32> to vector<8x8xf32>
    %cst_41 = arith.constant dense<0.000000e+00> : vector<8x8xf32>
    %145 = tpu.matmul %143, %144, %cst_41 {dimension_numbers = #tpu.dot_dimension_numbers<[1], [0], [0], [1], [0, 0, 1, 1], [], []>} : vector<8x8xf32>, vector<8x8xf32>, vector<8x8xf32> -> vector<8x8xf32>
    %146 = vector.extract_strided_slice %10 {offsets = [0, 5], sizes = [8, 1], strides = [1, 1]} : vector<8x8xf32> to vector<8x1xf32>
    %147 = vector.extract_strided_slice %9 {offsets = [5, 0], sizes = [1, 8], strides = [1, 1]} : vector<8x8xf32> to vector<1x8xf32>
    %148 = vector.broadcast %146 : vector<8x1xf32> to vector<8x8xf32>
    %149 = vector.broadcast %147 : vector<1x8xf32> to vector<8x8xf32>
    %150 = arith.addf %148, %149 : vector<8x8xf32>
    %c0_42 = arith.constant 0 : index
    %c5 = arith.constant 5 : index
    %151 = memref.load %arg1[%c0_42, %c5] : memref<3x8xf32, #tpu.memory_space<smem>>
    %152 = vector.broadcast %151 : f32 to vector<8x8xf32>
    %153 = arith.mulf %152, %4 : vector<8x8xf32>
    %154 = arith.addf %150, %153 : vector<8x8xf32>
    %cst_43 = arith.constant 0.000000e+00 : f32
    %155 = vector.broadcast %cst_43 : f32 to vector<8x8xf32>
    %156 = arith.cmpf ogt, %154, %155 : vector<8x8xf32>
    %cst_44 = arith.constant 2.000000e-01 : f32
    %157 = vector.broadcast %cst_44 : f32 to vector<8x8xf32>
    %158 = arith.mulf %157, %154 : vector<8x8xf32>
    %159 = arith.select %156, %154, %158 : vector<8x8xi1>, vector<8x8xf32>
    %160 = arith.addf %159, %3 : vector<8x8xf32>
    %cst_45 = arith.constant dense<0xFF800000> : vector<8xf32>
    %161 = vector.multi_reduction <maximumf>, %160, %cst_45 [1] : vector<8x8xf32> to vector<8xf32>
    %162 = vector.shape_cast %161 : vector<8xf32> to vector<8x1xf32>
    %163 = vector.broadcast %162 : vector<8x1xf32> to vector<8x8xf32>
    %164 = arith.subf %160, %163 : vector<8x8xf32>
    %165 = math.exp %164 : vector<8x8xf32>
    %cst_46 = arith.constant dense<0.000000e+00> : vector<8xf32>
    %166 = vector.multi_reduction <add>, %165, %cst_46 [1] : vector<8x8xf32> to vector<8xf32>
    %167 = vector.shape_cast %166 : vector<8xf32> to vector<8x1xf32>
    %168 = tpu.reciprocal %167 {approx = true} : vector<8x1xf32> -> vector<8x1xf32>
    %169 = vector.broadcast %168 : vector<8x1xf32> to vector<8x8xf32>
    %170 = arith.mulf %165, %169 : vector<8x8xf32>
    %171 = vector.extract_strided_slice %7 {offsets = [0, 40], sizes = [8, 8], strides = [1, 1]} : vector<8x64xf32> to vector<8x8xf32>
    %cst_47 = arith.constant dense<0.000000e+00> : vector<8x8xf32>
    %172 = tpu.matmul %170, %171, %cst_47 {dimension_numbers = #tpu.dot_dimension_numbers<[1], [0], [0], [1], [0, 0, 1, 1], [], []>} : vector<8x8xf32>, vector<8x8xf32>, vector<8x8xf32> -> vector<8x8xf32>
    %173 = vector.extract_strided_slice %10 {offsets = [0, 6], sizes = [8, 1], strides = [1, 1]} : vector<8x8xf32> to vector<8x1xf32>
    %174 = vector.extract_strided_slice %9 {offsets = [6, 0], sizes = [1, 8], strides = [1, 1]} : vector<8x8xf32> to vector<1x8xf32>
    %175 = vector.broadcast %173 : vector<8x1xf32> to vector<8x8xf32>
    %176 = vector.broadcast %174 : vector<1x8xf32> to vector<8x8xf32>
    %177 = arith.addf %175, %176 : vector<8x8xf32>
    %c0_48 = arith.constant 0 : index
    %c6 = arith.constant 6 : index
    %178 = memref.load %arg1[%c0_48, %c6] : memref<3x8xf32, #tpu.memory_space<smem>>
    %179 = vector.broadcast %178 : f32 to vector<8x8xf32>
    %180 = arith.mulf %179, %4 : vector<8x8xf32>
    %181 = arith.addf %177, %180 : vector<8x8xf32>
    %cst_49 = arith.constant 0.000000e+00 : f32
    %182 = vector.broadcast %cst_49 : f32 to vector<8x8xf32>
    %183 = arith.cmpf ogt, %181, %182 : vector<8x8xf32>
    %cst_50 = arith.constant 2.000000e-01 : f32
    %184 = vector.broadcast %cst_50 : f32 to vector<8x8xf32>
    %185 = arith.mulf %184, %181 : vector<8x8xf32>
    %186 = arith.select %183, %181, %185 : vector<8x8xi1>, vector<8x8xf32>
    %187 = arith.addf %186, %3 : vector<8x8xf32>
    %cst_51 = arith.constant dense<0xFF800000> : vector<8xf32>
    %188 = vector.multi_reduction <maximumf>, %187, %cst_51 [1] : vector<8x8xf32> to vector<8xf32>
    %189 = vector.shape_cast %188 : vector<8xf32> to vector<8x1xf32>
    %190 = vector.broadcast %189 : vector<8x1xf32> to vector<8x8xf32>
    %191 = arith.subf %187, %190 : vector<8x8xf32>
    %192 = math.exp %191 : vector<8x8xf32>
    %cst_52 = arith.constant dense<0.000000e+00> : vector<8xf32>
    %193 = vector.multi_reduction <add>, %192, %cst_52 [1] : vector<8x8xf32> to vector<8xf32>
    %194 = vector.shape_cast %193 : vector<8xf32> to vector<8x1xf32>
    %195 = tpu.reciprocal %194 {approx = true} : vector<8x1xf32> -> vector<8x1xf32>
    %196 = vector.broadcast %195 : vector<8x1xf32> to vector<8x8xf32>
    %197 = arith.mulf %192, %196 : vector<8x8xf32>
    %198 = vector.extract_strided_slice %7 {offsets = [0, 48], sizes = [8, 8], strides = [1, 1]} : vector<8x64xf32> to vector<8x8xf32>
    %cst_53 = arith.constant dense<0.000000e+00> : vector<8x8xf32>
    %199 = tpu.matmul %197, %198, %cst_53 {dimension_numbers = #tpu.dot_dimension_numbers<[1], [0], [0], [1], [0, 0, 1, 1], [], []>} : vector<8x8xf32>, vector<8x8xf32>, vector<8x8xf32> -> vector<8x8xf32>
    %200 = vector.extract_strided_slice %10 {offsets = [0, 7], sizes = [8, 1], strides = [1, 1]} : vector<8x8xf32> to vector<8x1xf32>
    %201 = vector.extract_strided_slice %9 {offsets = [7, 0], sizes = [1, 8], strides = [1, 1]} : vector<8x8xf32> to vector<1x8xf32>
    %202 = vector.broadcast %200 : vector<8x1xf32> to vector<8x8xf32>
    %203 = vector.broadcast %201 : vector<1x8xf32> to vector<8x8xf32>
    %204 = arith.addf %202, %203 : vector<8x8xf32>
    %c0_54 = arith.constant 0 : index
    %c7 = arith.constant 7 : index
    %205 = memref.load %arg1[%c0_54, %c7] : memref<3x8xf32, #tpu.memory_space<smem>>
    %206 = vector.broadcast %205 : f32 to vector<8x8xf32>
    %207 = arith.mulf %206, %4 : vector<8x8xf32>
    %208 = arith.addf %204, %207 : vector<8x8xf32>
    %cst_55 = arith.constant 0.000000e+00 : f32
    %209 = vector.broadcast %cst_55 : f32 to vector<8x8xf32>
    %210 = arith.cmpf ogt, %208, %209 : vector<8x8xf32>
    %cst_56 = arith.constant 2.000000e-01 : f32
    %211 = vector.broadcast %cst_56 : f32 to vector<8x8xf32>
    %212 = arith.mulf %211, %208 : vector<8x8xf32>
    %213 = arith.select %210, %208, %212 : vector<8x8xi1>, vector<8x8xf32>
    %214 = arith.addf %213, %3 : vector<8x8xf32>
    %cst_57 = arith.constant dense<0xFF800000> : vector<8xf32>
    %215 = vector.multi_reduction <maximumf>, %214, %cst_57 [1] : vector<8x8xf32> to vector<8xf32>
    %216 = vector.shape_cast %215 : vector<8xf32> to vector<8x1xf32>
    %217 = vector.broadcast %216 : vector<8x1xf32> to vector<8x8xf32>
    %218 = arith.subf %214, %217 : vector<8x8xf32>
    %219 = math.exp %218 : vector<8x8xf32>
    %cst_58 = arith.constant dense<0.000000e+00> : vector<8xf32>
    %220 = vector.multi_reduction <add>, %219, %cst_58 [1] : vector<8x8xf32> to vector<8xf32>
    %221 = vector.shape_cast %220 : vector<8xf32> to vector<8x1xf32>
    %222 = tpu.reciprocal %221 {approx = true} : vector<8x1xf32> -> vector<8x1xf32>
    %223 = vector.broadcast %222 : vector<8x1xf32> to vector<8x8xf32>
    %224 = arith.mulf %219, %223 : vector<8x8xf32>
    %225 = vector.extract_strided_slice %7 {offsets = [0, 56], sizes = [8, 8], strides = [1, 1]} : vector<8x64xf32> to vector<8x8xf32>
    %cst_59 = arith.constant dense<0.000000e+00> : vector<8x8xf32>
    %226 = tpu.matmul %224, %225, %cst_59 {dimension_numbers = #tpu.dot_dimension_numbers<[1], [0], [0], [1], [0, 0, 1, 1], [], []>} : vector<8x8xf32>, vector<8x8xf32>, vector<8x8xf32> -> vector<8x8xf32>
    %227 = tpu.concatenate %37, %64, %91, %118, %145, %172, %199, %226 in 1 : vector<8x8xf32>, vector<8x8xf32>, vector<8x8xf32>, vector<8x8xf32>, vector<8x8xf32>, vector<8x8xf32>, vector<8x8xf32>, vector<8x8xf32> -> vector<8x64xf32>
    %c0_60 = arith.constant 0 : index
    %c0_61 = arith.constant 0 : index
    %228 = vector.load %arg8[%c0_60, %c0_61] : memref<1x64xf32, #tpu.memory_space<vmem>>, vector<1x64xf32>
    %229 = vector.broadcast %228 : vector<1x64xf32> to vector<8x64xf32>
    %230 = arith.addf %227, %229 : vector<8x64xf32>
    %cst_62 = arith.constant 0.000000e+00 : f32
    %231 = vector.broadcast %cst_62 : f32 to vector<8x64xf32>
    %232 = arith.maximumf %230, %231 : vector<8x64xf32>
    %c0_63 = arith.constant 0 : index
    %c0_64 = arith.constant 0 : index
    %233 = vector.load %arg9[%c0_63, %c0_64] : memref<64x80xf32, #tpu.memory_space<vmem>>, vector<64x80xf32>
    %cst_65 = arith.constant dense<0.000000e+00> : vector<8x80xf32>
    %234 = tpu.matmul %232, %233, %cst_65 {dimension_numbers = #tpu.dot_dimension_numbers<[1], [0], [0], [1], [0, 0, 1, 1], [], []>} : vector<8x64xf32>, vector<64x80xf32>, vector<8x80xf32> -> vector<8x80xf32>
    %235 = vector.extract_strided_slice %234 {offsets = [0, 0], sizes = [8, 64], strides = [1, 1]} : vector<8x80xf32> to vector<8x64xf32>
    %236 = vector.extract_strided_slice %234 {offsets = [0, 64], sizes = [8, 8], strides = [1, 1]} : vector<8x80xf32> to vector<8x8xf32>
    %237 = tpu.transpose %236, [1, 0] : vector<8x8xf32> -> vector<8x8xf32>
    %238 = vector.extract_strided_slice %234 {offsets = [0, 72], sizes = [8, 8], strides = [1, 1]} : vector<8x80xf32> to vector<8x8xf32>
    %239 = vector.extract_strided_slice %238 {offsets = [0, 0], sizes = [8, 1], strides = [1, 1]} : vector<8x8xf32> to vector<8x1xf32>
    %240 = vector.extract_strided_slice %237 {offsets = [0, 0], sizes = [1, 8], strides = [1, 1]} : vector<8x8xf32> to vector<1x8xf32>
    %241 = vector.broadcast %239 : vector<8x1xf32> to vector<8x8xf32>
    %242 = vector.broadcast %240 : vector<1x8xf32> to vector<8x8xf32>
    %243 = arith.addf %241, %242 : vector<8x8xf32>
    %c1_66 = arith.constant 1 : index
    %c0_67 = arith.constant 0 : index
    %244 = memref.load %arg1[%c1_66, %c0_67] : memref<3x8xf32, #tpu.memory_space<smem>>
    %245 = vector.broadcast %244 : f32 to vector<8x8xf32>
    %246 = arith.mulf %245, %1 : vector<8x8xf32>
    %247 = arith.addf %243, %246 : vector<8x8xf32>
    %cst_68 = arith.constant 0.000000e+00 : f32
    %248 = vector.broadcast %cst_68 : f32 to vector<8x8xf32>
    %249 = arith.cmpf ogt, %247, %248 : vector<8x8xf32>
    %cst_69 = arith.constant 2.000000e-01 : f32
    %250 = vector.broadcast %cst_69 : f32 to vector<8x8xf32>
    %251 = arith.mulf %250, %247 : vector<8x8xf32>
    %252 = arith.select %249, %247, %251 : vector<8x8xi1>, vector<8x8xf32>
    %253 = arith.addf %252, %0 : vector<8x8xf32>
    %cst_70 = arith.constant dense<0xFF800000> : vector<8xf32>
    %254 = vector.multi_reduction <maximumf>, %253, %cst_70 [1] : vector<8x8xf32> to vector<8xf32>
    %255 = vector.shape_cast %254 : vector<8xf32> to vector<8x1xf32>
    %256 = vector.broadcast %255 : vector<8x1xf32> to vector<8x8xf32>
    %257 = arith.subf %253, %256 : vector<8x8xf32>
    %258 = math.exp %257 : vector<8x8xf32>
    %cst_71 = arith.constant dense<0.000000e+00> : vector<8xf32>
    %259 = vector.multi_reduction <add>, %258, %cst_71 [1] : vector<8x8xf32> to vector<8xf32>
    %260 = vector.shape_cast %259 : vector<8xf32> to vector<8x1xf32>
    %261 = tpu.reciprocal %260 {approx = true} : vector<8x1xf32> -> vector<8x1xf32>
    %262 = vector.broadcast %261 : vector<8x1xf32> to vector<8x8xf32>
    %263 = arith.mulf %258, %262 : vector<8x8xf32>
    %264 = vector.extract_strided_slice %235 {offsets = [0, 0], sizes = [8, 8], strides = [1, 1]} : vector<8x64xf32> to vector<8x8xf32>
    %cst_72 = arith.constant dense<0.000000e+00> : vector<8x8xf32>
    %265 = tpu.matmul %263, %264, %cst_72 {dimension_numbers = #tpu.dot_dimension_numbers<[1], [0], [0], [1], [0, 0, 1, 1], [], []>} : vector<8x8xf32>, vector<8x8xf32>, vector<8x8xf32> -> vector<8x8xf32>
    %266 = vector.extract_strided_slice %238 {offsets = [0, 1], sizes = [8, 1], strides = [1, 1]} : vector<8x8xf32> to vector<8x1xf32>
    %267 = vector.extract_strided_slice %237 {offsets = [1, 0], sizes = [1, 8], strides = [1, 1]} : vector<8x8xf32> to vector<1x8xf32>
    %268 = vector.broadcast %266 : vector<8x1xf32> to vector<8x8xf32>
    %269 = vector.broadcast %267 : vector<1x8xf32> to vector<8x8xf32>
    %270 = arith.addf %268, %269 : vector<8x8xf32>
    %c1_73 = arith.constant 1 : index
    %c1_74 = arith.constant 1 : index
    %271 = memref.load %arg1[%c1_73, %c1_74] : memref<3x8xf32, #tpu.memory_space<smem>>
    %272 = vector.broadcast %271 : f32 to vector<8x8xf32>
    %273 = arith.mulf %272, %1 : vector<8x8xf32>
    %274 = arith.addf %270, %273 : vector<8x8xf32>
    %cst_75 = arith.constant 0.000000e+00 : f32
    %275 = vector.broadcast %cst_75 : f32 to vector<8x8xf32>
    %276 = arith.cmpf ogt, %274, %275 : vector<8x8xf32>
    %cst_76 = arith.constant 2.000000e-01 : f32
    %277 = vector.broadcast %cst_76 : f32 to vector<8x8xf32>
    %278 = arith.mulf %277, %274 : vector<8x8xf32>
    %279 = arith.select %276, %274, %278 : vector<8x8xi1>, vector<8x8xf32>
    %280 = arith.addf %279, %0 : vector<8x8xf32>
    %cst_77 = arith.constant dense<0xFF800000> : vector<8xf32>
    %281 = vector.multi_reduction <maximumf>, %280, %cst_77 [1] : vector<8x8xf32> to vector<8xf32>
    %282 = vector.shape_cast %281 : vector<8xf32> to vector<8x1xf32>
    %283 = vector.broadcast %282 : vector<8x1xf32> to vector<8x8xf32>
    %284 = arith.subf %280, %283 : vector<8x8xf32>
    %285 = math.exp %284 : vector<8x8xf32>
    %cst_78 = arith.constant dense<0.000000e+00> : vector<8xf32>
    %286 = vector.multi_reduction <add>, %285, %cst_78 [1] : vector<8x8xf32> to vector<8xf32>
    %287 = vector.shape_cast %286 : vector<8xf32> to vector<8x1xf32>
    %288 = tpu.reciprocal %287 {approx = true} : vector<8x1xf32> -> vector<8x1xf32>
    %289 = vector.broadcast %288 : vector<8x1xf32> to vector<8x8xf32>
    %290 = arith.mulf %285, %289 : vector<8x8xf32>
    %291 = vector.extract_strided_slice %235 {offsets = [0, 8], sizes = [8, 8], strides = [1, 1]} : vector<8x64xf32> to vector<8x8xf32>
    %cst_79 = arith.constant dense<0.000000e+00> : vector<8x8xf32>
    %292 = tpu.matmul %290, %291, %cst_79 {dimension_numbers = #tpu.dot_dimension_numbers<[1], [0], [0], [1], [0, 0, 1, 1], [], []>} : vector<8x8xf32>, vector<8x8xf32>, vector<8x8xf32> -> vector<8x8xf32>
    %293 = vector.extract_strided_slice %238 {offsets = [0, 2], sizes = [8, 1], strides = [1, 1]} : vector<8x8xf32> to vector<8x1xf32>
    %294 = vector.extract_strided_slice %237 {offsets = [2, 0], sizes = [1, 8], strides = [1, 1]} : vector<8x8xf32> to vector<1x8xf32>
    %295 = vector.broadcast %293 : vector<8x1xf32> to vector<8x8xf32>
    %296 = vector.broadcast %294 : vector<1x8xf32> to vector<8x8xf32>
    %297 = arith.addf %295, %296 : vector<8x8xf32>
    %c1_80 = arith.constant 1 : index
    %c2_81 = arith.constant 2 : index
    %298 = memref.load %arg1[%c1_80, %c2_81] : memref<3x8xf32, #tpu.memory_space<smem>>
    %299 = vector.broadcast %298 : f32 to vector<8x8xf32>
    %300 = arith.mulf %299, %1 : vector<8x8xf32>
    %301 = arith.addf %297, %300 : vector<8x8xf32>
    %cst_82 = arith.constant 0.000000e+00 : f32
    %302 = vector.broadcast %cst_82 : f32 to vector<8x8xf32>
    %303 = arith.cmpf ogt, %301, %302 : vector<8x8xf32>
    %cst_83 = arith.constant 2.000000e-01 : f32
    %304 = vector.broadcast %cst_83 : f32 to vector<8x8xf32>
    %305 = arith.mulf %304, %301 : vector<8x8xf32>
    %306 = arith.select %303, %301, %305 : vector<8x8xi1>, vector<8x8xf32>
    %307 = arith.addf %306, %0 : vector<8x8xf32>
    %cst_84 = arith.constant dense<0xFF800000> : vector<8xf32>
    %308 = vector.multi_reduction <maximumf>, %307, %cst_84 [1] : vector<8x8xf32> to vector<8xf32>
    %309 = vector.shape_cast %308 : vector<8xf32> to vector<8x1xf32>
    %310 = vector.broadcast %309 : vector<8x1xf32> to vector<8x8xf32>
    %311 = arith.subf %307, %310 : vector<8x8xf32>
    %312 = math.exp %311 : vector<8x8xf32>
    %cst_85 = arith.constant dense<0.000000e+00> : vector<8xf32>
    %313 = vector.multi_reduction <add>, %312, %cst_85 [1] : vector<8x8xf32> to vector<8xf32>
    %314 = vector.shape_cast %313 : vector<8xf32> to vector<8x1xf32>
    %315 = tpu.reciprocal %314 {approx = true} : vector<8x1xf32> -> vector<8x1xf32>
    %316 = vector.broadcast %315 : vector<8x1xf32> to vector<8x8xf32>
    %317 = arith.mulf %312, %316 : vector<8x8xf32>
    %318 = vector.extract_strided_slice %235 {offsets = [0, 16], sizes = [8, 8], strides = [1, 1]} : vector<8x64xf32> to vector<8x8xf32>
    %cst_86 = arith.constant dense<0.000000e+00> : vector<8x8xf32>
    %319 = tpu.matmul %317, %318, %cst_86 {dimension_numbers = #tpu.dot_dimension_numbers<[1], [0], [0], [1], [0, 0, 1, 1], [], []>} : vector<8x8xf32>, vector<8x8xf32>, vector<8x8xf32> -> vector<8x8xf32>
    %320 = vector.extract_strided_slice %238 {offsets = [0, 3], sizes = [8, 1], strides = [1, 1]} : vector<8x8xf32> to vector<8x1xf32>
    %321 = vector.extract_strided_slice %237 {offsets = [3, 0], sizes = [1, 8], strides = [1, 1]} : vector<8x8xf32> to vector<1x8xf32>
    %322 = vector.broadcast %320 : vector<8x1xf32> to vector<8x8xf32>
    %323 = vector.broadcast %321 : vector<1x8xf32> to vector<8x8xf32>
    %324 = arith.addf %322, %323 : vector<8x8xf32>
    %c1_87 = arith.constant 1 : index
    %c3_88 = arith.constant 3 : index
    %325 = memref.load %arg1[%c1_87, %c3_88] : memref<3x8xf32, #tpu.memory_space<smem>>
    %326 = vector.broadcast %325 : f32 to vector<8x8xf32>
    %327 = arith.mulf %326, %1 : vector<8x8xf32>
    %328 = arith.addf %324, %327 : vector<8x8xf32>
    %cst_89 = arith.constant 0.000000e+00 : f32
    %329 = vector.broadcast %cst_89 : f32 to vector<8x8xf32>
    %330 = arith.cmpf ogt, %328, %329 : vector<8x8xf32>
    %cst_90 = arith.constant 2.000000e-01 : f32
    %331 = vector.broadcast %cst_90 : f32 to vector<8x8xf32>
    %332 = arith.mulf %331, %328 : vector<8x8xf32>
    %333 = arith.select %330, %328, %332 : vector<8x8xi1>, vector<8x8xf32>
    %334 = arith.addf %333, %0 : vector<8x8xf32>
    %cst_91 = arith.constant dense<0xFF800000> : vector<8xf32>
    %335 = vector.multi_reduction <maximumf>, %334, %cst_91 [1] : vector<8x8xf32> to vector<8xf32>
    %336 = vector.shape_cast %335 : vector<8xf32> to vector<8x1xf32>
    %337 = vector.broadcast %336 : vector<8x1xf32> to vector<8x8xf32>
    %338 = arith.subf %334, %337 : vector<8x8xf32>
    %339 = math.exp %338 : vector<8x8xf32>
    %cst_92 = arith.constant dense<0.000000e+00> : vector<8xf32>
    %340 = vector.multi_reduction <add>, %339, %cst_92 [1] : vector<8x8xf32> to vector<8xf32>
    %341 = vector.shape_cast %340 : vector<8xf32> to vector<8x1xf32>
    %342 = tpu.reciprocal %341 {approx = true} : vector<8x1xf32> -> vector<8x1xf32>
    %343 = vector.broadcast %342 : vector<8x1xf32> to vector<8x8xf32>
    %344 = arith.mulf %339, %343 : vector<8x8xf32>
    %345 = vector.extract_strided_slice %235 {offsets = [0, 24], sizes = [8, 8], strides = [1, 1]} : vector<8x64xf32> to vector<8x8xf32>
    %cst_93 = arith.constant dense<0.000000e+00> : vector<8x8xf32>
    %346 = tpu.matmul %344, %345, %cst_93 {dimension_numbers = #tpu.dot_dimension_numbers<[1], [0], [0], [1], [0, 0, 1, 1], [], []>} : vector<8x8xf32>, vector<8x8xf32>, vector<8x8xf32> -> vector<8x8xf32>
    %347 = vector.extract_strided_slice %238 {offsets = [0, 4], sizes = [8, 1], strides = [1, 1]} : vector<8x8xf32> to vector<8x1xf32>
    %348 = vector.extract_strided_slice %237 {offsets = [4, 0], sizes = [1, 8], strides = [1, 1]} : vector<8x8xf32> to vector<1x8xf32>
    %349 = vector.broadcast %347 : vector<8x1xf32> to vector<8x8xf32>
    %350 = vector.broadcast %348 : vector<1x8xf32> to vector<8x8xf32>
    %351 = arith.addf %349, %350 : vector<8x8xf32>
    %c1_94 = arith.constant 1 : index
    %c4_95 = arith.constant 4 : index
    %352 = memref.load %arg1[%c1_94, %c4_95] : memref<3x8xf32, #tpu.memory_space<smem>>
    %353 = vector.broadcast %352 : f32 to vector<8x8xf32>
    %354 = arith.mulf %353, %1 : vector<8x8xf32>
    %355 = arith.addf %351, %354 : vector<8x8xf32>
    %cst_96 = arith.constant 0.000000e+00 : f32
    %356 = vector.broadcast %cst_96 : f32 to vector<8x8xf32>
    %357 = arith.cmpf ogt, %355, %356 : vector<8x8xf32>
    %cst_97 = arith.constant 2.000000e-01 : f32
    %358 = vector.broadcast %cst_97 : f32 to vector<8x8xf32>
    %359 = arith.mulf %358, %355 : vector<8x8xf32>
    %360 = arith.select %357, %355, %359 : vector<8x8xi1>, vector<8x8xf32>
    %361 = arith.addf %360, %0 : vector<8x8xf32>
    %cst_98 = arith.constant dense<0xFF800000> : vector<8xf32>
    %362 = vector.multi_reduction <maximumf>, %361, %cst_98 [1] : vector<8x8xf32> to vector<8xf32>
    %363 = vector.shape_cast %362 : vector<8xf32> to vector<8x1xf32>
    %364 = vector.broadcast %363 : vector<8x1xf32> to vector<8x8xf32>
    %365 = arith.subf %361, %364 : vector<8x8xf32>
    %366 = math.exp %365 : vector<8x8xf32>
    %cst_99 = arith.constant dense<0.000000e+00> : vector<8xf32>
    %367 = vector.multi_reduction <add>, %366, %cst_99 [1] : vector<8x8xf32> to vector<8xf32>
    %368 = vector.shape_cast %367 : vector<8xf32> to vector<8x1xf32>
    %369 = tpu.reciprocal %368 {approx = true} : vector<8x1xf32> -> vector<8x1xf32>
    %370 = vector.broadcast %369 : vector<8x1xf32> to vector<8x8xf32>
    %371 = arith.mulf %366, %370 : vector<8x8xf32>
    %372 = vector.extract_strided_slice %235 {offsets = [0, 32], sizes = [8, 8], strides = [1, 1]} : vector<8x64xf32> to vector<8x8xf32>
    %cst_100 = arith.constant dense<0.000000e+00> : vector<8x8xf32>
    %373 = tpu.matmul %371, %372, %cst_100 {dimension_numbers = #tpu.dot_dimension_numbers<[1], [0], [0], [1], [0, 0, 1, 1], [], []>} : vector<8x8xf32>, vector<8x8xf32>, vector<8x8xf32> -> vector<8x8xf32>
    %374 = vector.extract_strided_slice %238 {offsets = [0, 5], sizes = [8, 1], strides = [1, 1]} : vector<8x8xf32> to vector<8x1xf32>
    %375 = vector.extract_strided_slice %237 {offsets = [5, 0], sizes = [1, 8], strides = [1, 1]} : vector<8x8xf32> to vector<1x8xf32>
    %376 = vector.broadcast %374 : vector<8x1xf32> to vector<8x8xf32>
    %377 = vector.broadcast %375 : vector<1x8xf32> to vector<8x8xf32>
    %378 = arith.addf %376, %377 : vector<8x8xf32>
    %c1_101 = arith.constant 1 : index
    %c5_102 = arith.constant 5 : index
    %379 = memref.load %arg1[%c1_101, %c5_102] : memref<3x8xf32, #tpu.memory_space<smem>>
    %380 = vector.broadcast %379 : f32 to vector<8x8xf32>
    %381 = arith.mulf %380, %1 : vector<8x8xf32>
    %382 = arith.addf %378, %381 : vector<8x8xf32>
    %cst_103 = arith.constant 0.000000e+00 : f32
    %383 = vector.broadcast %cst_103 : f32 to vector<8x8xf32>
    %384 = arith.cmpf ogt, %382, %383 : vector<8x8xf32>
    %cst_104 = arith.constant 2.000000e-01 : f32
    %385 = vector.broadcast %cst_104 : f32 to vector<8x8xf32>
    %386 = arith.mulf %385, %382 : vector<8x8xf32>
    %387 = arith.select %384, %382, %386 : vector<8x8xi1>, vector<8x8xf32>
    %388 = arith.addf %387, %0 : vector<8x8xf32>
    %cst_105 = arith.constant dense<0xFF800000> : vector<8xf32>
    %389 = vector.multi_reduction <maximumf>, %388, %cst_105 [1] : vector<8x8xf32> to vector<8xf32>
    %390 = vector.shape_cast %389 : vector<8xf32> to vector<8x1xf32>
    %391 = vector.broadcast %390 : vector<8x1xf32> to vector<8x8xf32>
    %392 = arith.subf %388, %391 : vector<8x8xf32>
    %393 = math.exp %392 : vector<8x8xf32>
    %cst_106 = arith.constant dense<0.000000e+00> : vector<8xf32>
    %394 = vector.multi_reduction <add>, %393, %cst_106 [1] : vector<8x8xf32> to vector<8xf32>
    %395 = vector.shape_cast %394 : vector<8xf32> to vector<8x1xf32>
    %396 = tpu.reciprocal %395 {approx = true} : vector<8x1xf32> -> vector<8x1xf32>
    %397 = vector.broadcast %396 : vector<8x1xf32> to vector<8x8xf32>
    %398 = arith.mulf %393, %397 : vector<8x8xf32>
    %399 = vector.extract_strided_slice %235 {offsets = [0, 40], sizes = [8, 8], strides = [1, 1]} : vector<8x64xf32> to vector<8x8xf32>
    %cst_107 = arith.constant dense<0.000000e+00> : vector<8x8xf32>
    %400 = tpu.matmul %398, %399, %cst_107 {dimension_numbers = #tpu.dot_dimension_numbers<[1], [0], [0], [1], [0, 0, 1, 1], [], []>} : vector<8x8xf32>, vector<8x8xf32>, vector<8x8xf32> -> vector<8x8xf32>
    %401 = vector.extract_strided_slice %238 {offsets = [0, 6], sizes = [8, 1], strides = [1, 1]} : vector<8x8xf32> to vector<8x1xf32>
    %402 = vector.extract_strided_slice %237 {offsets = [6, 0], sizes = [1, 8], strides = [1, 1]} : vector<8x8xf32> to vector<1x8xf32>
    %403 = vector.broadcast %401 : vector<8x1xf32> to vector<8x8xf32>
    %404 = vector.broadcast %402 : vector<1x8xf32> to vector<8x8xf32>
    %405 = arith.addf %403, %404 : vector<8x8xf32>
    %c1_108 = arith.constant 1 : index
    %c6_109 = arith.constant 6 : index
    %406 = memref.load %arg1[%c1_108, %c6_109] : memref<3x8xf32, #tpu.memory_space<smem>>
    %407 = vector.broadcast %406 : f32 to vector<8x8xf32>
    %408 = arith.mulf %407, %1 : vector<8x8xf32>
    %409 = arith.addf %405, %408 : vector<8x8xf32>
    %cst_110 = arith.constant 0.000000e+00 : f32
    %410 = vector.broadcast %cst_110 : f32 to vector<8x8xf32>
    %411 = arith.cmpf ogt, %409, %410 : vector<8x8xf32>
    %cst_111 = arith.constant 2.000000e-01 : f32
    %412 = vector.broadcast %cst_111 : f32 to vector<8x8xf32>
    %413 = arith.mulf %412, %409 : vector<8x8xf32>
    %414 = arith.select %411, %409, %413 : vector<8x8xi1>, vector<8x8xf32>
    %415 = arith.addf %414, %0 : vector<8x8xf32>
    %cst_112 = arith.constant dense<0xFF800000> : vector<8xf32>
    %416 = vector.multi_reduction <maximumf>, %415, %cst_112 [1] : vector<8x8xf32> to vector<8xf32>
    %417 = vector.shape_cast %416 : vector<8xf32> to vector<8x1xf32>
    %418 = vector.broadcast %417 : vector<8x1xf32> to vector<8x8xf32>
    %419 = arith.subf %415, %418 : vector<8x8xf32>
    %420 = math.exp %419 : vector<8x8xf32>
    %cst_113 = arith.constant dense<0.000000e+00> : vector<8xf32>
    %421 = vector.multi_reduction <add>, %420, %cst_113 [1] : vector<8x8xf32> to vector<8xf32>
    %422 = vector.shape_cast %421 : vector<8xf32> to vector<8x1xf32>
    %423 = tpu.reciprocal %422 {approx = true} : vector<8x1xf32> -> vector<8x1xf32>
    %424 = vector.broadcast %423 : vector<8x1xf32> to vector<8x8xf32>
    %425 = arith.mulf %420, %424 : vector<8x8xf32>
    %426 = vector.extract_strided_slice %235 {offsets = [0, 48], sizes = [8, 8], strides = [1, 1]} : vector<8x64xf32> to vector<8x8xf32>
    %cst_114 = arith.constant dense<0.000000e+00> : vector<8x8xf32>
    %427 = tpu.matmul %425, %426, %cst_114 {dimension_numbers = #tpu.dot_dimension_numbers<[1], [0], [0], [1], [0, 0, 1, 1], [], []>} : vector<8x8xf32>, vector<8x8xf32>, vector<8x8xf32> -> vector<8x8xf32>
    %428 = vector.extract_strided_slice %238 {offsets = [0, 7], sizes = [8, 1], strides = [1, 1]} : vector<8x8xf32> to vector<8x1xf32>
    %429 = vector.extract_strided_slice %237 {offsets = [7, 0], sizes = [1, 8], strides = [1, 1]} : vector<8x8xf32> to vector<1x8xf32>
    %430 = vector.broadcast %428 : vector<8x1xf32> to vector<8x8xf32>
    %431 = vector.broadcast %429 : vector<1x8xf32> to vector<8x8xf32>
    %432 = arith.addf %430, %431 : vector<8x8xf32>
    %c1_115 = arith.constant 1 : index
    %c7_116 = arith.constant 7 : index
    %433 = memref.load %arg1[%c1_115, %c7_116] : memref<3x8xf32, #tpu.memory_space<smem>>
    %434 = vector.broadcast %433 : f32 to vector<8x8xf32>
    %435 = arith.mulf %434, %1 : vector<8x8xf32>
    %436 = arith.addf %432, %435 : vector<8x8xf32>
    %cst_117 = arith.constant 0.000000e+00 : f32
    %437 = vector.broadcast %cst_117 : f32 to vector<8x8xf32>
    %438 = arith.cmpf ogt, %436, %437 : vector<8x8xf32>
    %cst_118 = arith.constant 2.000000e-01 : f32
    %439 = vector.broadcast %cst_118 : f32 to vector<8x8xf32>
    %440 = arith.mulf %439, %436 : vector<8x8xf32>
    %441 = arith.select %438, %436, %440 : vector<8x8xi1>, vector<8x8xf32>
    %442 = arith.addf %441, %0 : vector<8x8xf32>
    %cst_119 = arith.constant dense<0xFF800000> : vector<8xf32>
    %443 = vector.multi_reduction <maximumf>, %442, %cst_119 [1] : vector<8x8xf32> to vector<8xf32>
    %444 = vector.shape_cast %443 : vector<8xf32> to vector<8x1xf32>
    %445 = vector.broadcast %444 : vector<8x1xf32> to vector<8x8xf32>
    %446 = arith.subf %442, %445 : vector<8x8xf32>
    %447 = math.exp %446 : vector<8x8xf32>
    %cst_120 = arith.constant dense<0.000000e+00> : vector<8xf32>
    %448 = vector.multi_reduction <add>, %447, %cst_120 [1] : vector<8x8xf32> to vector<8xf32>
    %449 = vector.shape_cast %448 : vector<8xf32> to vector<8x1xf32>
    %450 = tpu.reciprocal %449 {approx = true} : vector<8x1xf32> -> vector<8x1xf32>
    %451 = vector.broadcast %450 : vector<8x1xf32> to vector<8x8xf32>
    %452 = arith.mulf %447, %451 : vector<8x8xf32>
    %453 = vector.extract_strided_slice %235 {offsets = [0, 56], sizes = [8, 8], strides = [1, 1]} : vector<8x64xf32> to vector<8x8xf32>
    %cst_121 = arith.constant dense<0.000000e+00> : vector<8x8xf32>
    %454 = tpu.matmul %452, %453, %cst_121 {dimension_numbers = #tpu.dot_dimension_numbers<[1], [0], [0], [1], [0, 0, 1, 1], [], []>} : vector<8x8xf32>, vector<8x8xf32>, vector<8x8xf32> -> vector<8x8xf32>
    %455 = tpu.concatenate %265, %292, %319, %346, %373, %400, %427, %454 in 1 : vector<8x8xf32>, vector<8x8xf32>, vector<8x8xf32>, vector<8x8xf32>, vector<8x8xf32>, vector<8x8xf32>, vector<8x8xf32>, vector<8x8xf32> -> vector<8x64xf32>
    %c0_122 = arith.constant 0 : index
    %c0_123 = arith.constant 0 : index
    %456 = vector.load %arg10[%c0_122, %c0_123] : memref<1x64xf32, #tpu.memory_space<vmem>>, vector<1x64xf32>
    %457 = vector.broadcast %456 : vector<1x64xf32> to vector<8x64xf32>
    %458 = arith.addf %455, %457 : vector<8x64xf32>
    %cst_124 = arith.constant 0.000000e+00 : f32
    %459 = vector.broadcast %cst_124 : f32 to vector<8x64xf32>
    %460 = arith.maximumf %458, %459 : vector<8x64xf32>
    %c0_125 = arith.constant 0 : index
    %c0_126 = arith.constant 0 : index
    %461 = vector.load %arg11[%c0_125, %c0_126] : memref<64x80xf32, #tpu.memory_space<vmem>>, vector<64x80xf32>
    %cst_127 = arith.constant dense<0.000000e+00> : vector<8x80xf32>
    %462 = tpu.matmul %460, %461, %cst_127 {dimension_numbers = #tpu.dot_dimension_numbers<[1], [0], [0], [1], [0, 0, 1, 1], [], []>} : vector<8x64xf32>, vector<64x80xf32>, vector<8x80xf32> -> vector<8x80xf32>
    %463 = vector.extract_strided_slice %462 {offsets = [0, 0], sizes = [8, 64], strides = [1, 1]} : vector<8x80xf32> to vector<8x64xf32>
    %464 = vector.extract_strided_slice %462 {offsets = [0, 64], sizes = [8, 8], strides = [1, 1]} : vector<8x80xf32> to vector<8x8xf32>
    %465 = tpu.transpose %464, [1, 0] : vector<8x8xf32> -> vector<8x8xf32>
    %466 = vector.extract_strided_slice %462 {offsets = [0, 72], sizes = [8, 8], strides = [1, 1]} : vector<8x80xf32> to vector<8x8xf32>
    %467 = vector.extract_strided_slice %466 {offsets = [0, 0], sizes = [8, 1], strides = [1, 1]} : vector<8x8xf32> to vector<8x1xf32>
    %468 = vector.extract_strided_slice %465 {offsets = [0, 0], sizes = [1, 8], strides = [1, 1]} : vector<8x8xf32> to vector<1x8xf32>
    %469 = vector.broadcast %467 : vector<8x1xf32> to vector<8x8xf32>
    %470 = vector.broadcast %468 : vector<1x8xf32> to vector<8x8xf32>
    %471 = arith.addf %469, %470 : vector<8x8xf32>
    %c2_128 = arith.constant 2 : index
    %c0_129 = arith.constant 0 : index
    %472 = memref.load %arg1[%c2_128, %c0_129] : memref<3x8xf32, #tpu.memory_space<smem>>
    %473 = vector.broadcast %472 : f32 to vector<8x8xf32>
    %474 = arith.mulf %473, %1 : vector<8x8xf32>
    %475 = arith.addf %471, %474 : vector<8x8xf32>
    %cst_130 = arith.constant 0.000000e+00 : f32
    %476 = vector.broadcast %cst_130 : f32 to vector<8x8xf32>
    %477 = arith.cmpf ogt, %475, %476 : vector<8x8xf32>
    %cst_131 = arith.constant 2.000000e-01 : f32
    %478 = vector.broadcast %cst_131 : f32 to vector<8x8xf32>
    %479 = arith.mulf %478, %475 : vector<8x8xf32>
    %480 = arith.select %477, %475, %479 : vector<8x8xi1>, vector<8x8xf32>
    %481 = arith.addf %480, %0 : vector<8x8xf32>
    %cst_132 = arith.constant dense<0xFF800000> : vector<8xf32>
    %482 = vector.multi_reduction <maximumf>, %481, %cst_132 [1] : vector<8x8xf32> to vector<8xf32>
    %483 = vector.shape_cast %482 : vector<8xf32> to vector<8x1xf32>
    %484 = vector.broadcast %483 : vector<8x1xf32> to vector<8x8xf32>
    %485 = arith.subf %481, %484 : vector<8x8xf32>
    %486 = math.exp %485 : vector<8x8xf32>
    %cst_133 = arith.constant dense<0.000000e+00> : vector<8xf32>
    %487 = vector.multi_reduction <add>, %486, %cst_133 [1] : vector<8x8xf32> to vector<8xf32>
    %488 = vector.shape_cast %487 : vector<8xf32> to vector<8x1xf32>
    %489 = tpu.reciprocal %488 {approx = true} : vector<8x1xf32> -> vector<8x1xf32>
    %490 = vector.broadcast %489 : vector<8x1xf32> to vector<8x8xf32>
    %491 = arith.mulf %486, %490 : vector<8x8xf32>
    %492 = vector.extract_strided_slice %463 {offsets = [0, 0], sizes = [8, 8], strides = [1, 1]} : vector<8x64xf32> to vector<8x8xf32>
    %cst_134 = arith.constant dense<0.000000e+00> : vector<8x8xf32>
    %493 = tpu.matmul %491, %492, %cst_134 {dimension_numbers = #tpu.dot_dimension_numbers<[1], [0], [0], [1], [0, 0, 1, 1], [], []>} : vector<8x8xf32>, vector<8x8xf32>, vector<8x8xf32> -> vector<8x8xf32>
    %494 = vector.extract_strided_slice %466 {offsets = [0, 1], sizes = [8, 1], strides = [1, 1]} : vector<8x8xf32> to vector<8x1xf32>
    %495 = vector.extract_strided_slice %465 {offsets = [1, 0], sizes = [1, 8], strides = [1, 1]} : vector<8x8xf32> to vector<1x8xf32>
    %496 = vector.broadcast %494 : vector<8x1xf32> to vector<8x8xf32>
    %497 = vector.broadcast %495 : vector<1x8xf32> to vector<8x8xf32>
    %498 = arith.addf %496, %497 : vector<8x8xf32>
    %c2_135 = arith.constant 2 : index
    %c1_136 = arith.constant 1 : index
    %499 = memref.load %arg1[%c2_135, %c1_136] : memref<3x8xf32, #tpu.memory_space<smem>>
    %500 = vector.broadcast %499 : f32 to vector<8x8xf32>
    %501 = arith.mulf %500, %1 : vector<8x8xf32>
    %502 = arith.addf %498, %501 : vector<8x8xf32>
    %cst_137 = arith.constant 0.000000e+00 : f32
    %503 = vector.broadcast %cst_137 : f32 to vector<8x8xf32>
    %504 = arith.cmpf ogt, %502, %503 : vector<8x8xf32>
    %cst_138 = arith.constant 2.000000e-01 : f32
    %505 = vector.broadcast %cst_138 : f32 to vector<8x8xf32>
    %506 = arith.mulf %505, %502 : vector<8x8xf32>
    %507 = arith.select %504, %502, %506 : vector<8x8xi1>, vector<8x8xf32>
    %508 = arith.addf %507, %0 : vector<8x8xf32>
    %cst_139 = arith.constant dense<0xFF800000> : vector<8xf32>
    %509 = vector.multi_reduction <maximumf>, %508, %cst_139 [1] : vector<8x8xf32> to vector<8xf32>
    %510 = vector.shape_cast %509 : vector<8xf32> to vector<8x1xf32>
    %511 = vector.broadcast %510 : vector<8x1xf32> to vector<8x8xf32>
    %512 = arith.subf %508, %511 : vector<8x8xf32>
    %513 = math.exp %512 : vector<8x8xf32>
    %cst_140 = arith.constant dense<0.000000e+00> : vector<8xf32>
    %514 = vector.multi_reduction <add>, %513, %cst_140 [1] : vector<8x8xf32> to vector<8xf32>
    %515 = vector.shape_cast %514 : vector<8xf32> to vector<8x1xf32>
    %516 = tpu.reciprocal %515 {approx = true} : vector<8x1xf32> -> vector<8x1xf32>
    %517 = vector.broadcast %516 : vector<8x1xf32> to vector<8x8xf32>
    %518 = arith.mulf %513, %517 : vector<8x8xf32>
    %519 = vector.extract_strided_slice %463 {offsets = [0, 8], sizes = [8, 8], strides = [1, 1]} : vector<8x64xf32> to vector<8x8xf32>
    %cst_141 = arith.constant dense<0.000000e+00> : vector<8x8xf32>
    %520 = tpu.matmul %518, %519, %cst_141 {dimension_numbers = #tpu.dot_dimension_numbers<[1], [0], [0], [1], [0, 0, 1, 1], [], []>} : vector<8x8xf32>, vector<8x8xf32>, vector<8x8xf32> -> vector<8x8xf32>
    %521 = vector.extract_strided_slice %466 {offsets = [0, 2], sizes = [8, 1], strides = [1, 1]} : vector<8x8xf32> to vector<8x1xf32>
    %522 = vector.extract_strided_slice %465 {offsets = [2, 0], sizes = [1, 8], strides = [1, 1]} : vector<8x8xf32> to vector<1x8xf32>
    %523 = vector.broadcast %521 : vector<8x1xf32> to vector<8x8xf32>
    %524 = vector.broadcast %522 : vector<1x8xf32> to vector<8x8xf32>
    %525 = arith.addf %523, %524 : vector<8x8xf32>
    %c2_142 = arith.constant 2 : index
    %c2_143 = arith.constant 2 : index
    %526 = memref.load %arg1[%c2_142, %c2_143] : memref<3x8xf32, #tpu.memory_space<smem>>
    %527 = vector.broadcast %526 : f32 to vector<8x8xf32>
    %528 = arith.mulf %527, %1 : vector<8x8xf32>
    %529 = arith.addf %525, %528 : vector<8x8xf32>
    %cst_144 = arith.constant 0.000000e+00 : f32
    %530 = vector.broadcast %cst_144 : f32 to vector<8x8xf32>
    %531 = arith.cmpf ogt, %529, %530 : vector<8x8xf32>
    %cst_145 = arith.constant 2.000000e-01 : f32
    %532 = vector.broadcast %cst_145 : f32 to vector<8x8xf32>
    %533 = arith.mulf %532, %529 : vector<8x8xf32>
    %534 = arith.select %531, %529, %533 : vector<8x8xi1>, vector<8x8xf32>
    %535 = arith.addf %534, %0 : vector<8x8xf32>
    %cst_146 = arith.constant dense<0xFF800000> : vector<8xf32>
    %536 = vector.multi_reduction <maximumf>, %535, %cst_146 [1] : vector<8x8xf32> to vector<8xf32>
    %537 = vector.shape_cast %536 : vector<8xf32> to vector<8x1xf32>
    %538 = vector.broadcast %537 : vector<8x1xf32> to vector<8x8xf32>
    %539 = arith.subf %535, %538 : vector<8x8xf32>
    %540 = math.exp %539 : vector<8x8xf32>
    %cst_147 = arith.constant dense<0.000000e+00> : vector<8xf32>
    %541 = vector.multi_reduction <add>, %540, %cst_147 [1] : vector<8x8xf32> to vector<8xf32>
    %542 = vector.shape_cast %541 : vector<8xf32> to vector<8x1xf32>
    %543 = tpu.reciprocal %542 {approx = true} : vector<8x1xf32> -> vector<8x1xf32>
    %544 = vector.broadcast %543 : vector<8x1xf32> to vector<8x8xf32>
    %545 = arith.mulf %540, %544 : vector<8x8xf32>
    %546 = vector.extract_strided_slice %463 {offsets = [0, 16], sizes = [8, 8], strides = [1, 1]} : vector<8x64xf32> to vector<8x8xf32>
    %cst_148 = arith.constant dense<0.000000e+00> : vector<8x8xf32>
    %547 = tpu.matmul %545, %546, %cst_148 {dimension_numbers = #tpu.dot_dimension_numbers<[1], [0], [0], [1], [0, 0, 1, 1], [], []>} : vector<8x8xf32>, vector<8x8xf32>, vector<8x8xf32> -> vector<8x8xf32>
    %548 = vector.extract_strided_slice %466 {offsets = [0, 3], sizes = [8, 1], strides = [1, 1]} : vector<8x8xf32> to vector<8x1xf32>
    %549 = vector.extract_strided_slice %465 {offsets = [3, 0], sizes = [1, 8], strides = [1, 1]} : vector<8x8xf32> to vector<1x8xf32>
    %550 = vector.broadcast %548 : vector<8x1xf32> to vector<8x8xf32>
    %551 = vector.broadcast %549 : vector<1x8xf32> to vector<8x8xf32>
    %552 = arith.addf %550, %551 : vector<8x8xf32>
    %c2_149 = arith.constant 2 : index
    %c3_150 = arith.constant 3 : index
    %553 = memref.load %arg1[%c2_149, %c3_150] : memref<3x8xf32, #tpu.memory_space<smem>>
    %554 = vector.broadcast %553 : f32 to vector<8x8xf32>
    %555 = arith.mulf %554, %1 : vector<8x8xf32>
    %556 = arith.addf %552, %555 : vector<8x8xf32>
    %cst_151 = arith.constant 0.000000e+00 : f32
    %557 = vector.broadcast %cst_151 : f32 to vector<8x8xf32>
    %558 = arith.cmpf ogt, %556, %557 : vector<8x8xf32>
    %cst_152 = arith.constant 2.000000e-01 : f32
    %559 = vector.broadcast %cst_152 : f32 to vector<8x8xf32>
    %560 = arith.mulf %559, %556 : vector<8x8xf32>
    %561 = arith.select %558, %556, %560 : vector<8x8xi1>, vector<8x8xf32>
    %562 = arith.addf %561, %0 : vector<8x8xf32>
    %cst_153 = arith.constant dense<0xFF800000> : vector<8xf32>
    %563 = vector.multi_reduction <maximumf>, %562, %cst_153 [1] : vector<8x8xf32> to vector<8xf32>
    %564 = vector.shape_cast %563 : vector<8xf32> to vector<8x1xf32>
    %565 = vector.broadcast %564 : vector<8x1xf32> to vector<8x8xf32>
    %566 = arith.subf %562, %565 : vector<8x8xf32>
    %567 = math.exp %566 : vector<8x8xf32>
    %cst_154 = arith.constant dense<0.000000e+00> : vector<8xf32>
    %568 = vector.multi_reduction <add>, %567, %cst_154 [1] : vector<8x8xf32> to vector<8xf32>
    %569 = vector.shape_cast %568 : vector<8xf32> to vector<8x1xf32>
    %570 = tpu.reciprocal %569 {approx = true} : vector<8x1xf32> -> vector<8x1xf32>
    %571 = vector.broadcast %570 : vector<8x1xf32> to vector<8x8xf32>
    %572 = arith.mulf %567, %571 : vector<8x8xf32>
    %573 = vector.extract_strided_slice %463 {offsets = [0, 24], sizes = [8, 8], strides = [1, 1]} : vector<8x64xf32> to vector<8x8xf32>
    %cst_155 = arith.constant dense<0.000000e+00> : vector<8x8xf32>
    %574 = tpu.matmul %572, %573, %cst_155 {dimension_numbers = #tpu.dot_dimension_numbers<[1], [0], [0], [1], [0, 0, 1, 1], [], []>} : vector<8x8xf32>, vector<8x8xf32>, vector<8x8xf32> -> vector<8x8xf32>
    %575 = vector.extract_strided_slice %466 {offsets = [0, 4], sizes = [8, 1], strides = [1, 1]} : vector<8x8xf32> to vector<8x1xf32>
    %576 = vector.extract_strided_slice %465 {offsets = [4, 0], sizes = [1, 8], strides = [1, 1]} : vector<8x8xf32> to vector<1x8xf32>
    %577 = vector.broadcast %575 : vector<8x1xf32> to vector<8x8xf32>
    %578 = vector.broadcast %576 : vector<1x8xf32> to vector<8x8xf32>
    %579 = arith.addf %577, %578 : vector<8x8xf32>
    %c2_156 = arith.constant 2 : index
    %c4_157 = arith.constant 4 : index
    %580 = memref.load %arg1[%c2_156, %c4_157] : memref<3x8xf32, #tpu.memory_space<smem>>
    %581 = vector.broadcast %580 : f32 to vector<8x8xf32>
    %582 = arith.mulf %581, %1 : vector<8x8xf32>
    %583 = arith.addf %579, %582 : vector<8x8xf32>
    %cst_158 = arith.constant 0.000000e+00 : f32
    %584 = vector.broadcast %cst_158 : f32 to vector<8x8xf32>
    %585 = arith.cmpf ogt, %583, %584 : vector<8x8xf32>
    %cst_159 = arith.constant 2.000000e-01 : f32
    %586 = vector.broadcast %cst_159 : f32 to vector<8x8xf32>
    %587 = arith.mulf %586, %583 : vector<8x8xf32>
    %588 = arith.select %585, %583, %587 : vector<8x8xi1>, vector<8x8xf32>
    %589 = arith.addf %588, %0 : vector<8x8xf32>
    %cst_160 = arith.constant dense<0xFF800000> : vector<8xf32>
    %590 = vector.multi_reduction <maximumf>, %589, %cst_160 [1] : vector<8x8xf32> to vector<8xf32>
    %591 = vector.shape_cast %590 : vector<8xf32> to vector<8x1xf32>
    %592 = vector.broadcast %591 : vector<8x1xf32> to vector<8x8xf32>
    %593 = arith.subf %589, %592 : vector<8x8xf32>
    %594 = math.exp %593 : vector<8x8xf32>
    %cst_161 = arith.constant dense<0.000000e+00> : vector<8xf32>
    %595 = vector.multi_reduction <add>, %594, %cst_161 [1] : vector<8x8xf32> to vector<8xf32>
    %596 = vector.shape_cast %595 : vector<8xf32> to vector<8x1xf32>
    %597 = tpu.reciprocal %596 {approx = true} : vector<8x1xf32> -> vector<8x1xf32>
    %598 = vector.broadcast %597 : vector<8x1xf32> to vector<8x8xf32>
    %599 = arith.mulf %594, %598 : vector<8x8xf32>
    %600 = vector.extract_strided_slice %463 {offsets = [0, 32], sizes = [8, 8], strides = [1, 1]} : vector<8x64xf32> to vector<8x8xf32>
    %cst_162 = arith.constant dense<0.000000e+00> : vector<8x8xf32>
    %601 = tpu.matmul %599, %600, %cst_162 {dimension_numbers = #tpu.dot_dimension_numbers<[1], [0], [0], [1], [0, 0, 1, 1], [], []>} : vector<8x8xf32>, vector<8x8xf32>, vector<8x8xf32> -> vector<8x8xf32>
    %602 = vector.extract_strided_slice %466 {offsets = [0, 5], sizes = [8, 1], strides = [1, 1]} : vector<8x8xf32> to vector<8x1xf32>
    %603 = vector.extract_strided_slice %465 {offsets = [5, 0], sizes = [1, 8], strides = [1, 1]} : vector<8x8xf32> to vector<1x8xf32>
    %604 = vector.broadcast %602 : vector<8x1xf32> to vector<8x8xf32>
    %605 = vector.broadcast %603 : vector<1x8xf32> to vector<8x8xf32>
    %606 = arith.addf %604, %605 : vector<8x8xf32>
    %c2_163 = arith.constant 2 : index
    %c5_164 = arith.constant 5 : index
    %607 = memref.load %arg1[%c2_163, %c5_164] : memref<3x8xf32, #tpu.memory_space<smem>>
    %608 = vector.broadcast %607 : f32 to vector<8x8xf32>
    %609 = arith.mulf %608, %1 : vector<8x8xf32>
    %610 = arith.addf %606, %609 : vector<8x8xf32>
    %cst_165 = arith.constant 0.000000e+00 : f32
    %611 = vector.broadcast %cst_165 : f32 to vector<8x8xf32>
    %612 = arith.cmpf ogt, %610, %611 : vector<8x8xf32>
    %cst_166 = arith.constant 2.000000e-01 : f32
    %613 = vector.broadcast %cst_166 : f32 to vector<8x8xf32>
    %614 = arith.mulf %613, %610 : vector<8x8xf32>
    %615 = arith.select %612, %610, %614 : vector<8x8xi1>, vector<8x8xf32>
    %616 = arith.addf %615, %0 : vector<8x8xf32>
    %cst_167 = arith.constant dense<0xFF800000> : vector<8xf32>
    %617 = vector.multi_reduction <maximumf>, %616, %cst_167 [1] : vector<8x8xf32> to vector<8xf32>
    %618 = vector.shape_cast %617 : vector<8xf32> to vector<8x1xf32>
    %619 = vector.broadcast %618 : vector<8x1xf32> to vector<8x8xf32>
    %620 = arith.subf %616, %619 : vector<8x8xf32>
    %621 = math.exp %620 : vector<8x8xf32>
    %cst_168 = arith.constant dense<0.000000e+00> : vector<8xf32>
    %622 = vector.multi_reduction <add>, %621, %cst_168 [1] : vector<8x8xf32> to vector<8xf32>
    %623 = vector.shape_cast %622 : vector<8xf32> to vector<8x1xf32>
    %624 = tpu.reciprocal %623 {approx = true} : vector<8x1xf32> -> vector<8x1xf32>
    %625 = vector.broadcast %624 : vector<8x1xf32> to vector<8x8xf32>
    %626 = arith.mulf %621, %625 : vector<8x8xf32>
    %627 = vector.extract_strided_slice %463 {offsets = [0, 40], sizes = [8, 8], strides = [1, 1]} : vector<8x64xf32> to vector<8x8xf32>
    %cst_169 = arith.constant dense<0.000000e+00> : vector<8x8xf32>
    %628 = tpu.matmul %626, %627, %cst_169 {dimension_numbers = #tpu.dot_dimension_numbers<[1], [0], [0], [1], [0, 0, 1, 1], [], []>} : vector<8x8xf32>, vector<8x8xf32>, vector<8x8xf32> -> vector<8x8xf32>
    %629 = vector.extract_strided_slice %466 {offsets = [0, 6], sizes = [8, 1], strides = [1, 1]} : vector<8x8xf32> to vector<8x1xf32>
    %630 = vector.extract_strided_slice %465 {offsets = [6, 0], sizes = [1, 8], strides = [1, 1]} : vector<8x8xf32> to vector<1x8xf32>
    %631 = vector.broadcast %629 : vector<8x1xf32> to vector<8x8xf32>
    %632 = vector.broadcast %630 : vector<1x8xf32> to vector<8x8xf32>
    %633 = arith.addf %631, %632 : vector<8x8xf32>
    %c2_170 = arith.constant 2 : index
    %c6_171 = arith.constant 6 : index
    %634 = memref.load %arg1[%c2_170, %c6_171] : memref<3x8xf32, #tpu.memory_space<smem>>
    %635 = vector.broadcast %634 : f32 to vector<8x8xf32>
    %636 = arith.mulf %635, %1 : vector<8x8xf32>
    %637 = arith.addf %633, %636 : vector<8x8xf32>
    %cst_172 = arith.constant 0.000000e+00 : f32
    %638 = vector.broadcast %cst_172 : f32 to vector<8x8xf32>
    %639 = arith.cmpf ogt, %637, %638 : vector<8x8xf32>
    %cst_173 = arith.constant 2.000000e-01 : f32
    %640 = vector.broadcast %cst_173 : f32 to vector<8x8xf32>
    %641 = arith.mulf %640, %637 : vector<8x8xf32>
    %642 = arith.select %639, %637, %641 : vector<8x8xi1>, vector<8x8xf32>
    %643 = arith.addf %642, %0 : vector<8x8xf32>
    %cst_174 = arith.constant dense<0xFF800000> : vector<8xf32>
    %644 = vector.multi_reduction <maximumf>, %643, %cst_174 [1] : vector<8x8xf32> to vector<8xf32>
    %645 = vector.shape_cast %644 : vector<8xf32> to vector<8x1xf32>
    %646 = vector.broadcast %645 : vector<8x1xf32> to vector<8x8xf32>
    %647 = arith.subf %643, %646 : vector<8x8xf32>
    %648 = math.exp %647 : vector<8x8xf32>
    %cst_175 = arith.constant dense<0.000000e+00> : vector<8xf32>
    %649 = vector.multi_reduction <add>, %648, %cst_175 [1] : vector<8x8xf32> to vector<8xf32>
    %650 = vector.shape_cast %649 : vector<8xf32> to vector<8x1xf32>
    %651 = tpu.reciprocal %650 {approx = true} : vector<8x1xf32> -> vector<8x1xf32>
    %652 = vector.broadcast %651 : vector<8x1xf32> to vector<8x8xf32>
    %653 = arith.mulf %648, %652 : vector<8x8xf32>
    %654 = vector.extract_strided_slice %463 {offsets = [0, 48], sizes = [8, 8], strides = [1, 1]} : vector<8x64xf32> to vector<8x8xf32>
    %cst_176 = arith.constant dense<0.000000e+00> : vector<8x8xf32>
    %655 = tpu.matmul %653, %654, %cst_176 {dimension_numbers = #tpu.dot_dimension_numbers<[1], [0], [0], [1], [0, 0, 1, 1], [], []>} : vector<8x8xf32>, vector<8x8xf32>, vector<8x8xf32> -> vector<8x8xf32>
    %656 = vector.extract_strided_slice %466 {offsets = [0, 7], sizes = [8, 1], strides = [1, 1]} : vector<8x8xf32> to vector<8x1xf32>
    %657 = vector.extract_strided_slice %465 {offsets = [7, 0], sizes = [1, 8], strides = [1, 1]} : vector<8x8xf32> to vector<1x8xf32>
    %658 = vector.broadcast %656 : vector<8x1xf32> to vector<8x8xf32>
    %659 = vector.broadcast %657 : vector<1x8xf32> to vector<8x8xf32>
    %660 = arith.addf %658, %659 : vector<8x8xf32>
    %c2_177 = arith.constant 2 : index
    %c7_178 = arith.constant 7 : index
    %661 = memref.load %arg1[%c2_177, %c7_178] : memref<3x8xf32, #tpu.memory_space<smem>>
    %662 = vector.broadcast %661 : f32 to vector<8x8xf32>
    %663 = arith.mulf %662, %1 : vector<8x8xf32>
    %664 = arith.addf %660, %663 : vector<8x8xf32>
    %cst_179 = arith.constant 0.000000e+00 : f32
    %665 = vector.broadcast %cst_179 : f32 to vector<8x8xf32>
    %666 = arith.cmpf ogt, %664, %665 : vector<8x8xf32>
    %cst_180 = arith.constant 2.000000e-01 : f32
    %667 = vector.broadcast %cst_180 : f32 to vector<8x8xf32>
    %668 = arith.mulf %667, %664 : vector<8x8xf32>
    %669 = arith.select %666, %664, %668 : vector<8x8xi1>, vector<8x8xf32>
    %670 = arith.addf %669, %0 : vector<8x8xf32>
    %cst_181 = arith.constant dense<0xFF800000> : vector<8xf32>
    %671 = vector.multi_reduction <maximumf>, %670, %cst_181 [1] : vector<8x8xf32> to vector<8xf32>
    %672 = vector.shape_cast %671 : vector<8xf32> to vector<8x1xf32>
    %673 = vector.broadcast %672 : vector<8x1xf32> to vector<8x8xf32>
    %674 = arith.subf %670, %673 : vector<8x8xf32>
    %675 = math.exp %674 : vector<8x8xf32>
    %cst_182 = arith.constant dense<0.000000e+00> : vector<8xf32>
    %676 = vector.multi_reduction <add>, %675, %cst_182 [1] : vector<8x8xf32> to vector<8xf32>
    %677 = vector.shape_cast %676 : vector<8xf32> to vector<8x1xf32>
    %678 = tpu.reciprocal %677 {approx = true} : vector<8x1xf32> -> vector<8x1xf32>
    %679 = vector.broadcast %678 : vector<8x1xf32> to vector<8x8xf32>
    %680 = arith.mulf %675, %679 : vector<8x8xf32>
    %681 = vector.extract_strided_slice %463 {offsets = [0, 56], sizes = [8, 8], strides = [1, 1]} : vector<8x64xf32> to vector<8x8xf32>
    %cst_183 = arith.constant dense<0.000000e+00> : vector<8x8xf32>
    %682 = tpu.matmul %680, %681, %cst_183 {dimension_numbers = #tpu.dot_dimension_numbers<[1], [0], [0], [1], [0, 0, 1, 1], [], []>} : vector<8x8xf32>, vector<8x8xf32>, vector<8x8xf32> -> vector<8x8xf32>
    %683 = tpu.concatenate %493, %520, %547, %574, %601, %628, %655, %682 in 1 : vector<8x8xf32>, vector<8x8xf32>, vector<8x8xf32>, vector<8x8xf32>, vector<8x8xf32>, vector<8x8xf32>, vector<8x8xf32>, vector<8x8xf32> -> vector<8x64xf32>
    %c0_184 = arith.constant 0 : index
    %c0_185 = arith.constant 0 : index
    %684 = vector.load %arg12[%c0_184, %c0_185] : memref<1x64xf32, #tpu.memory_space<vmem>>, vector<1x64xf32>
    %685 = vector.broadcast %684 : vector<1x64xf32> to vector<8x64xf32>
    %686 = arith.addf %683, %685 : vector<8x64xf32>
    %cst_186 = arith.constant 0.000000e+00 : f32
    %687 = vector.broadcast %cst_186 : f32 to vector<8x64xf32>
    %688 = arith.maximumf %686, %687 : vector<8x64xf32>
    %c0_187 = arith.constant 0 : index
    %c0_188 = arith.constant 0 : index
    %689 = vector.load %arg13[%c0_187, %c0_188] : memref<2x8xf32, #tpu.memory_space<vmem>>, vector<2x8xf32>
    %cst_189 = arith.constant dense<0.000000e+00> : vector<2x64xf32>
    %690 = tpu.matmul %689, %688, %cst_189 {dimension_numbers = #tpu.dot_dimension_numbers<[1], [0], [0], [1], [0, 0, 1, 1], [], []>} : vector<2x8xf32>, vector<8x64xf32>, vector<2x64xf32> -> vector<2x64xf32>
    %c0_190 = arith.constant 0 : index
    %c0_191 = arith.constant 0 : index
    %691 = vector.load %arg14[%c0_190, %c0_191] : memref<64x32xf32, #tpu.memory_space<vmem>>, vector<64x32xf32>
    %cst_192 = arith.constant dense<0.000000e+00> : vector<2x32xf32>
    %692 = tpu.matmul %690, %691, %cst_192 {dimension_numbers = #tpu.dot_dimension_numbers<[1], [0], [0], [1], [0, 0, 1, 1], [], []>} : vector<2x64xf32>, vector<64x32xf32>, vector<2x32xf32> -> vector<2x32xf32>
    %c0_193 = arith.constant 0 : index
    %c0_194 = arith.constant 0 : index
    %693 = vector.load %arg15[%c0_193, %c0_194] : memref<1x32xf32, #tpu.memory_space<vmem>>, vector<1x32xf32>
    %694 = vector.broadcast %693 : vector<1x32xf32> to vector<2x32xf32>
    %695 = arith.addf %692, %694 : vector<2x32xf32>
    %cst_195 = arith.constant 0.000000e+00 : f32
    %696 = vector.broadcast %cst_195 : f32 to vector<2x32xf32>
    %697 = arith.maximumf %695, %696 : vector<2x32xf32>
    %c0_196 = arith.constant 0 : index
    %c0_197 = arith.constant 0 : index
    %698 = vector.load %arg16[%c0_196, %c0_197] : memref<32x4xf32, #tpu.memory_space<vmem>>, vector<32x4xf32>
    %cst_198 = arith.constant dense<0.000000e+00> : vector<2x4xf32>
    %699 = tpu.matmul %697, %698, %cst_198 {dimension_numbers = #tpu.dot_dimension_numbers<[1], [0], [0], [1], [0, 0, 1, 1], [], []>} : vector<2x32xf32>, vector<32x4xf32>, vector<2x4xf32> -> vector<2x4xf32>
    %c0_199 = arith.constant 0 : index
    %c0_200 = arith.constant 0 : index
    %700 = vector.load %arg17[%c0_199, %c0_200] : memref<1x4xf32, #tpu.memory_space<vmem>>, vector<1x4xf32>
    %701 = vector.broadcast %700 : vector<1x4xf32> to vector<2x4xf32>
    %702 = arith.addf %699, %701 : vector<2x4xf32>
    %c0_201 = arith.constant 0 : index
    %c0_202 = arith.constant 0 : index
    %703 = vector.load %arg18[%c0_201, %c0_202] : memref<2x4xf32, #tpu.memory_space<vmem>>, vector<2x4xf32>
    tpu.vector_store %arg18[%c0_201, %c0_202], %702 {strides = array<i32>} : memref<2x4xf32, #tpu.memory_space<vmem>>, vector<2x4xf32>,
    return
  }
  func.func @transform_0(%arg0: i32) -> (i32, i32) {
    %c0_i32 = arith.constant 0 : i32
    %c0_i32_0 = arith.constant 0 : i32
    %c0_i32_1 = arith.constant 0 : i32
    return %c0_i32, %c0_i32_0 : i32, i32
  }
  func.func @transform_1(%arg0: i32) -> (i32, i32) {
    %c0_i32 = arith.constant 0 : i32
    %c0_i32_0 = arith.constant 0 : i32
    %c0_i32_1 = arith.constant 0 : i32
    return %c0_i32, %c0_i32_0 : i32, i32
  }
  func.func @transform_2(%arg0: i32) -> (i32, i32) {
    %c0_i32 = arith.constant 0 : i32
    %c0_i32_0 = arith.constant 0 : i32
    %c0_i32_1 = arith.constant 0 : i32
    return %c0_i32, %c0_i32_0 : i32, i32
  }
  func.func @transform_3(%arg0: i32) -> (i32, i32) {
    %c0_i32 = arith.constant 0 : i32
    %c0_i32_0 = arith.constant 0 : i32
    %c0_i32_1 = arith.constant 0 : i32
    return %c0_i32, %c0_i32_0 : i32, i32
  }
  func.func @transform_4(%arg0: i32) -> (i32, i32) {
    %c0_i32 = arith.constant 0 : i32
    %c0_i32_0 = arith.constant 0 : i32
    %c0_i32_1 = arith.constant 0 : i32
    return %c0_i32, %c0_i32_0 : i32, i32
  }
  func.func @transform_5(%arg0: i32) -> (i32, i32) {
    %c0_i32 = arith.constant 0 : i32
    %c0_i32_0 = arith.constant 0 : i32
    %c0_i32_1 = arith.constant 0 : i32
    return %c0_i32, %c0_i32_0 : i32, i32
  }
  func.func @transform_6(%arg0: i32) -> (i32, i32) {
    %c0_i32 = arith.constant 0 : i32
    %c0_i32_0 = arith.constant 0 : i32
    %c0_i32_1 = arith.constant 0 : i32
    return %c0_i32, %c0_i32_0 : i32, i32
  }
  func.func @transform_7(%arg0: i32) -> (i32, i32) {
    %c0_i32 = arith.constant 0 : i32
    %c0_i32_0 = arith.constant 0 : i32
    %c0_i32_1 = arith.constant 0 : i32
    return %c0_i32, %c0_i32_0 : i32, i32
  }
  func.func @transform_8(%arg0: i32) -> (i32, i32) {
    %c0_i32 = arith.constant 0 : i32
    %c0_i32_0 = arith.constant 0 : i32
    %c0_i32_1 = arith.constant 0 : i32
    return %c0_i32, %c0_i32_0 : i32, i32
  }
  func.func @transform_9(%arg0: i32) -> (i32, i32) {
    %c0_i32 = arith.constant 0 : i32
    %c0_i32_0 = arith.constant 0 : i32
    %c0_i32_1 = arith.constant 0 : i32
    return %c0_i32, %c0_i32_0 : i32, i32
  }
  func.func @transform_10(%arg0: i32) -> (i32, i32) {
    %c0_i32 = arith.constant 0 : i32
    %c0_i32_0 = arith.constant 0 : i32
    %c0_i32_1 = arith.constant 0 : i32
    return %c0_i32, %c0_i32_0 : i32, i32
  }
  func.func @transform_11(%arg0: i32) -> (i32, i32) {
    %c0_i32 = arith.constant 0 : i32
    %c0_i32_0 = arith.constant 0 : i32
    %c0_i32_1 = arith.constant 0 : i32
    return %c0_i32, %c0_i32_0 : i32, i32
  }
  func.func @transform_12(%arg0: i32) -> (i32, i32) {
    %c0_i32 = arith.constant 0 : i32
    %c0_i32_0 = arith.constant 0 : i32
    %c0_i32_1 = arith.constant 0 : i32
    return %c0_i32, %c0_i32_0 : i32, i32
  }
  func.func @transform_13(%arg0: i32) -> (i32, i32) {
    %c0_i32 = arith.constant 0 : i32
    %c0_i32_0 = arith.constant 0 : i32
    %c0_i32_1 = arith.constant 0 : i32
    return %c0_i32, %c0_i32_0 : i32, i32
  }
  func.func @transform_14(%arg0: i32) -> (i32, i32) {
    %c0_i32 = arith.constant 0 : i32
    %c0_i32_0 = arith.constant 0 : i32
    %c0_i32_1 = arith.constant 0 : i32
    return %c0_i32, %c0_i32_0 : i32, i32
  }
  func.func @transform_15(%arg0: i32) -> (i32, i32) {
    %c0_i32 = arith.constant 0 : i32
    %c0_i32_0 = arith.constant 0 : i32
    %c0_i32_1 = arith.constant 0 : i32
    return %c0_i32, %c0_i32_0 : i32, i32
  }
  func.func @transform_16(%arg0: i32) -> (i32, i32) {
    %c0_i32 = arith.constant 0 : i32
    %c0_i32_0 = arith.constant 0 : i32
    %c0_i32_1 = arith.constant 0 : i32
    return %c0_i32, %c0_i32_0 : i32, i32
  }
  func.func @transform_17(%arg0: i32) -> (i32, i32) {
    %c0_i32 = arith.constant 0 : i32
    %c0_i32_0 = arith.constant 0 : i32
    %c0_i32_1 = arith.constant 0 : i32
    return %c0_i32, %c0_i32_0 : i32, i32
  }
}

</mosaic_0001>

<bundles_post_ra>
// kernel: tpu_custom_call.1
= control target key start
LH: loop header
LB: loop body
LE: loop exit
PB: predicated region body
PF: predicated region fallthrough
CT: control target
= control target key end

     0   :  { %s2832_s0 = inlined_call_operand.vmem [shape: f32[3,8], index: 0, kind: input, shape index: {}]   ;;  %s2833_s1 = inlined_call_operand.vmem [shape: f32[8,6], index: 1, kind: input, shape index: {}]   ;;  %s2834_s2 = inlined_call_operand.vmem [shape: f32[8,8], index: 2, kind: input, shape index: {}]   ;;  %s2835_s3 = inlined_call_operand.vmem [shape: f32[8,8], index: 3, kind: input, shape index: {}]   ;;  %s2836_s4 = inlined_call_operand.vmem [shape: f32[8,8], index: 4, kind: input, shape index: {}]   ;;  %s2837_s5 = inlined_call_operand.vmem [shape: f32[8,8], index: 5, kind: input, shape index: {}]   ;;  %s2838_s6 = inlined_call_operand.hbm [shape: f32[6,80], index: 6, kind: input, shape index: {}]   ;;  %s2839_s7 = inlined_call_operand.vmem [shape: f32[1,64], index: 7, kind: input, shape index: {}]   ;;  %s2840_s8 = inlined_call_operand.vmem [shape: f32[64,80], index: 8, kind: input, shape index: {}]   ;;  %s2841_s9 = inlined_call_operand.hbm [shape: f32[1,64], index: 9, kind: input, shape index: {}]   ;;  %s2842_s10 = inlined_call_operand.hbm [shape: f32[64,80], index: 10, kind: input, shape index: {}]   ;;  %s2843_s11 = inlined_call_operand.hbm [shape: f32[1,64], index: 11, kind: input, shape index: {}]   ;;  %s2844_s12 = inlined_call_operand.hbm [shape: f32[2,8], index: 12, kind: input, shape index: {}]   ;;  %s2845_s13 = inlined_call_operand.vmem [shape: f32[64,32], index: 13, kind: input, shape index: {}]   ;;  %s2846_s14 = inlined_call_operand.hbm [shape: f32[1,32], index: 14, kind: input, shape index: {}]   ;;  %s2847_s15 = inlined_call_operand.vmem [shape: f32[32,4], index: 15, kind: input, shape index: {}]   ;;  %s2848_s16 = inlined_call_operand.vmem [shape: f32[1,4], index: 16, kind: input, shape index: {}]   ;;  %s2849_s17 = inlined_call_operand.hbm [shape: f32[2,4], index: 17, kind: output, shape index: {}]  }
   0x1   :  { %2854 = sst [smem:[#allocation22_spill]] %s2832_s0 }
   0x2   :  { %2855 = sst [smem:[#allocation23_spill]] %s2833_s1 }
   0x3   :  { %22 = vsyncpa [#allocation5], 0 }
   0x4   :  { %23 = vsyncpa [#allocation3], 0 }
   0x5   :  { %24 = vsyncpa [#allocation8], 0 }
   0x6   :  { %25 = vsyncpa [#allocation11], 0 }
   0x7   :  { %26 = vsyncpa [#allocation14], 0  ;;  %s67_s26 = sshll.u32 %s2841_s9, 4  ;;  %s68_s26 = int_to_ptr.hbm [resolvable:$true] %s67_s26 }
   0x8   :  { %27 = vsyncpa [#allocation4], 0  ;;  %s2222_s27 = smov [#allocation7]   ;;  %s91_s30 = sshll.u32 %s2843_s11, 4  ;;  %s92_s30 = int_to_ptr.hbm [resolvable:$true] %s91_s30 }
   0x9   :  { %s69_s28 = sshll.u32 %s2222_s27, 4  ;;  %s2223_s18 = smov [#allocation10]   ;;  %s70_s28 = int_to_ptr.vmem [resolvable:$true] %s69_s28 }
   0xa   :  { %72 = dma.hbm_to_vmem [thread:$0]  %s68_s26, 16, %s70_s28, [#allocation8]  }
   0xb   :  { %s93_s19 = sshll.u32 %s2223_s18, 4  ;;  %s2856_s21 = sld [smem:[#allocation22_spill]]  ;;  %s94_s19 = int_to_ptr.vmem [resolvable:$true] %s93_s19 }
   0xc   :  { %96 = dma.hbm_to_vmem [thread:$0]  %s92_s30, 16, %s94_s19, [#allocation11]  }
   0xd   :  { %s52_s24 = sshll.u32 %s2838_s6, 4  ;;  %s2224_s25 = smov [#allocation2]   ;;  %s53_s24 = int_to_ptr.hbm [resolvable:$true] %s52_s24 }
   0xe   :  { %s2225_s27 = smov [#allocation6]   ;;  %s77_s29 = sshll.u32 %s2842_s10, 4  ;;  %s78_s29 = int_to_ptr.hbm [resolvable:$true] %s77_s29 }
   0xf   :  { %s54_s11 = sshll.u32 %s2225_s27, 4  ;;  %s2226_s0 = smov [#allocation9]   ;;  %s55_s11 = int_to_ptr.vmem [resolvable:$true] %s54_s11 }
  0x10   :  { %57 = dma.hbm_to_vmem [thread:$0]  %s53_s24, 128, %s55_s11, [#allocation3]  }
  0x11   :  { %s33_s22 = sshll.u32 %s2856_s21, 4  ;;  %s79_s18 = sshll.u32 %s2226_s0, 4  ;;  %s34_s22 = int_to_ptr.vmem [resolvable:$true] %s33_s22  ;;  %s80_s18 = int_to_ptr.vmem [resolvable:$true] %s79_s18 }
  0x12   :  { %36 = dma.vmem_to_smem %s34_s22, 64, %s2224_s25, [#allocation5]  }
  0x13   :  { %s102_s1 = sshll.u32 %s2844_s12, 4  ;;  %s2227_s6 = smov 128   ;;  %s103_s1 = int_to_ptr.hbm [resolvable:$true] %s102_s1 }
  0x14   :  { %s2228_s20 = smov 8   ;;  %s2229_s21 = smov [#allocation12]  }
  0x15   :  { %85 = dma.hbm_to_vmem [thread:$0]  %s78_s29, 1024, %s80_s18, [#allocation8], %s2227_s6, %s2227_s6, %s2228_s20  }
  0x16   :  { %s104_s22 = sshll.u32 %s2229_s21, 4  ;;  %s115_s10 = sshll.u32 %s2846_s14, 4  ;;  %s105_s22 = int_to_ptr.vmem [resolvable:$true] %s104_s22  ;;  %s116_s10 = int_to_ptr.hbm [resolvable:$true] %s115_s10 }
  0x17   :  { %107 = dma.hbm_to_vmem [thread:$0]  %s103_s1, 32, %s105_s22, [#allocation11]  }
  0x18   :  { %s2230_s24 = smov [#allocation13]  }
  0x19   :  { %s117_s25 = sshll.u32 %s2230_s24, 4  ;;  %s118_s25 = int_to_ptr.vmem [resolvable:$true] %s117_s25 }
  0x1a   :  { %120 = dma.hbm_to_vmem [thread:$0]  %s116_s10, 16, %s118_s25, [#allocation14]  }
  0x1b   :  { %2210 = dma.done.wait [#allocation5], 64  }
  0x1c   :  { %2211 = vsyncadd [#allocation5], 4294967232 }
  0x1d   :  { %2212 = dma.done.wait [#allocation3], 128  }
  0x1e   :  { %2213 = vsyncadd [#allocation3], 4294967168 }
  0x1f   :  { %2214 = dma.done.wait [#allocation8], 1040  }
  0x20   :  { %2215 = vsyncadd [#allocation8], 4294966256 }
  0x21   :  { %2216 = dma.done.wait [#allocation11], 48  }
  0x22   :  { %2217 = vsyncadd [#allocation11], 4294967248 }
  0x23   :  { %2218 = dma.done.wait [#allocation14], 16  }
  0x24   :  { %2219 = vsyncadd [#allocation14], 4294967280 }
  0x25   :  { %153 = sfence }
  0x26   :  { %v159_v0 = vld [vmem:[#allocation6] sm:$0x3f]  ;;  %vm164_vm0 = vcmask 1045504   ;;  %s2857_s27 = sld [smem:[#allocation23_spill]]  ;;  %vm160_vm1 = vcmask 48128   ;;  %v2231_v2 = vmov 75  }
  0x27   :  { %1818 = vmatpush.msk.msra.mxu0 %vm164_vm0, %v159_v0  ;;  %1908 = vset.pattern.permute.xlu2 %v2231_v2  ;;  %v2232_v3 = vmov 74   ;;  %v2233_v4 = vmov 73   ;;  %s2234_s11 = smov 64   ;;  %v2235_v6 = vmov 77   ;;  %v2236_v7 = vmov 72   ;;  %s1829_s26 = sld [smem:[#allocation2 + $0x5]] }
  0x28   :  { %1906 = vset.pattern.permute.xlu1 %v2232_v3  ;;  %1905 = vset.pattern.permute.xlu0 %v2233_v4  ;;  %v2237_v8 = vmov 79   ;;  %v2238_v9 = vmov 76   ;;  %v2239_v10 = vmov 78   ;;  %s1823_s28 = sld [smem:[#allocation2 + $0x2]]  ;;  %v2400_v17 = vld [vmem:[%s2835_s3] sm:$0xff]  ;;  %vm238_vm4 = vcmask 64512  }
  0x29   :  { %s1821_s29 = sld [smem:[#allocation2 + $0x1]]  ;;  %v2422_v50 = vld [vmem:[%s2834_s2] sm:$0xff]  ;;  %s2240_s2 = smov 112   ;;  %vm659_vm11 = vcmask 130048   ;;  %vm661_vm12 = vcmask 195584   ;;  %vm663_vm13 = vcmask 261120  }
  0x2a   :  { %s230_s0 = sld [smem:[#allocation2]]  ;;  %s2241_s22 = smov 104   ;;  %vm665_vm14 = vcmask 326656   ;;  %vm667_vm15 = vcmask 392192   ;;  %vm669_vm0 = vcmask 457728  }
  0x2b   :  { %s1831_s18 = sld [smem:[#allocation2 + $0x6]]  ;;  %s2242_s23 = smov 96  }
  0x2c   :  { %v156_v1 = vld [vmem:[%s2857_s27] sm:$0xff]  ;;  %s2393_s30 = sld [smem:[#allocation2 + $0x7]]  ;;  %s2243_s10 = smov 120  }
  0x2d   :  { %1819 = vmatmul.msk.f32.vlgmr.msra.gmra.mxu0 %vm160_vm1, %v156_v1  ;;  %s2395_s19 = sld [smem:[#allocation2 + $0x3]]  ;;  %v484_v18 = vstv %s1829_s26  ;;  %s2244_s24 = smov 88   ;;  %vm685_vm1 = vcmask 523264  }
  0x2e   :  { %v331_v19 = vstv %s1823_s28  ;;  %v485_v24 = vmul.f32 %v484_v18, %v2400_v17  ;;  %s1827_s9 = sld [smem:[#allocation2 + $0x4]]  ;;  %s2245_s25 = smov 72  }
  0x2f   :  { %v280_v20 = vstv %s1821_s29  ;;  %v332_v25 = vmul.f32 %v331_v19, %v2400_v17  ;;  %s2246_s12 = smov 80   ;;  %s2247_s14 = smov 16  }
  0x30   :  { %v231_v21 = vstv %s230_s0  ;;  %v281_v26 = vmul.f32 %v280_v20, %v2400_v17  ;;  %s2248_s27 = smov 24   ;;  %s2850_s26 = smov 40  }
  0x31   :  { %v535_v22 = vstv %s1831_s18  ;;  %v232_v33 = vmul.f32 %v231_v21, %v2400_v17  ;;  %s2250_s28 = smov 32   ;;  %s2251_s29 = smov 56  }
  0x32   :  { %v586_v27 = vstv %s2393_s30  ;;  %v536_v35 = vmul.f32 %v535_v22, %v2400_v17  ;;  %s2852_s0 = smov 48   ;;  %s1836_s21 = sld [smem:[#allocation2 + $0x80]] }
  0x33   :  { %v382_v43 = vstv %s2395_s19  ;;  %v587_v45 = vmul.f32 %v586_v27, %v2400_v17  ;;  %s1844_s19 = sld [smem:[#allocation2 + $0x84]] }
  0x34   :  { %v383_v56 = vmul.f32 %v382_v43, %v2400_v17  ;;  %s1850_s1 = sld [smem:[#allocation2 + $0x87]] }
  0x35   :  { %s1846_s6 = sld [smem:[#allocation2 + $0x85]] }
  0x36   :  { %s1848_s3 = sld [smem:[#allocation2 + $0x86]] }
  0x37   :  { %s1865_s18 = sld [smem:[#allocation2 + $0x106]] }
  0xaa   :  { %v2372_v5 = vpop.f32.mrf.mxu0 }
  0xab   :  { %376 = vperm.xlu2 %1908, %v2372_v5   ;;  %325 = vperm.xlu1 %1906, %v2372_v5  }
  0xac   :  { %189 = vrot.lane.b32.xlu0 %v2372_v5, %s2234_s11  ;;  %268 = vmatpush.msra.mxu1 %v2372_v5 }
  0xb3   :  { %1909 = vset.pattern.permute.xlu2 %v2235_v6  ;;  %1907 = vset.pattern.permute.xlu1 %v2236_v7 }
  0xb4   :  { %274 = vperm.xlu0 %1905, %v2372_v5   ;;  %478 = vperm.xlu2 %1909, %v2372_v5  }
  0xb5   :  { %225 = vperm.xlu1 %1907, %v2372_v5  }
  0xbc   :  { %1912 = vset.pattern.permute.xlu0 %v2237_v8  ;;  %1911 = vset.pattern.permute.xlu2 %v2238_v9 }
  0xbd   :  { %1910 = vset.pattern.permute.xlu1 %v2239_v10  ;;  %580 = vperm.xlu0 %1912, %v2372_v5  }
  0xbe   :  { %427 = vperm.xlu2 %1911, %v2372_v5   ;;  %529 = vperm.xlu1 %1910, %v2372_v5  }
  0xc5   :  { %1914 = vset.pattern.permute.xlu0 %v2233_v4 }
  0xc6   :  { %1913 = vset.pattern.permute.xlu2 %v2236_v7 }
 0x105   :  { %v377_v14 = vpop.permute.xlu2 %376 }
 0x10e   :  { %v479_v32 = vpop.permute.xlu2 %478 }
 0x11d   :  { %v326_v12 = vpop.permute.xlu1 %325 }
 0x11e   :  { %v190_v11 = vpop.permute.xlu0 %189 }
 0x11f   :  { %192 = vxpose.xlu1.b32.start.end [1/1] (short) (narrow) %v190_v11, 8 }
 0x126   :  { %v275_v16 = vpop.permute.xlu0 %274 }
 0x127   :  { %v226_v13 = vpop.permute.xlu1 %225 }
 0x12f   :  { %v581_v41 = vpop.permute.xlu0 %580 }
 0x130   :  { %v530_v15 = vpop.permute.xlu1 %529 }
 0x172   :  { %1915 = vset.pattern.permute.xlu1 %v2231_v2 }
 0x1c3   :  { %v2402_v23 = vpop.trf.xlu1 }
 0x1c4   :  { %v481_v28 = vperm.slane %v2402_v23, 5  ;;  %v328_v29 = vperm.slane %v2402_v23, 2  ;;  %v277_v30 = vperm.slane %v2402_v23, 1  ;;  %v228_v31 = vperm.slane %v2402_v23, 0 }
 0x1c5   :  { %v532_v34 = vperm.slane %v2402_v23, 6  ;;  %v583_v36 = vperm.slane %v2402_v23, 7  ;;  %v379_v42 = vperm.slane %v2402_v23, 3 }
 0x1c6   :  { %v482_v37 = vadd.f32 %v481_v28, %v479_v32  ;;  %v329_v38 = vadd.f32 %v328_v29, %v326_v12  ;;  %v278_v39 = vadd.f32 %v277_v30, %v275_v16  ;;  %v229_v40 = vadd.f32 %v228_v31, %v226_v13  ;;  %v428_v32 = vpop.permute.xlu2 %427 }
 0x1c7   :  { %v533_v44 = vadd.f32 %v532_v34, %v530_v15  ;;  %v584_v49 = vadd.f32 %v583_v36, %v581_v41  ;;  %v380_v59 = vadd.f32 %v379_v42, %v377_v14  ;;  %v430_v30 = vperm.slane %v2402_v23, 4 }
 0x1c8   :  { %v486_v46 = vadd.f32 %v485_v24, %v482_v37  ;;  %v333_v47 = vadd.f32 %v332_v25, %v329_v38  ;;  %v282_v48 = vadd.f32 %v281_v26, %v278_v39  ;;  %v233_v51 = vadd.f32 %v232_v33, %v229_v40 }
 0x1c9   :  { %v537_v52 = vadd.f32 %v536_v35, %v533_v44  ;;  %v588_v60 = vadd.f32 %v587_v45, %v584_v49  ;;  %v384_v16 = vadd.f32 %v383_v56, %v380_v59  ;;  %v433_v31 = vstv %s1827_s9  ;;  %s2677_s9 = sld [smem:[#allocation2 + $0x103]] }
 0x1ca   :  { %vm487_vm2 = vcmp.gt.f32.partialorder %v486_v46, 0.0  ;;  %v488_v53 = vmul.f32 0.2, %v486_v46  ;;  %vm334_vm3 = vcmp.gt.f32.partialorder %v333_v47, 0.0  ;;  %v335_v54 = vmul.f32 0.2, %v333_v47 }
 0x1cb   :  { %vm283_vm5 = vcmp.gt.f32.partialorder %v282_v48, 0.0  ;;  %v284_v55 = vmul.f32 0.2, %v282_v48  ;;  %v235_v0 = vmul.f32 0.2, %v233_v51  ;;  %vm234_vm6 = vcmp.gt.f32.partialorder %v233_v51, 0.0 }
 0x1cc   :  { %v489_v57 = vsel %vm487_vm2, %v486_v46, %v488_v53  ;;  %v336_v58 = vsel %vm334_vm3, %v333_v47, %v335_v54  ;;  %vm538_vm7 = vcmp.gt.f32.partialorder %v537_v52, 0.0  ;;  %v539_v14 = vmul.f32 0.2, %v537_v52 }
 0x1cd   :  { %v2426_v61 = vadd.f32 %v489_v57, %v2422_v50  ;;  %v337_v62 = vadd.f32 %v336_v58, %v2422_v50  ;;  %v285_v63 = vsel %vm283_vm5, %v282_v48, %v284_v55  ;;  %v236_v15 = vsel %vm234_vm6, %v233_v51, %v235_v0 }
 0x1ce   :  { %v286_v1 = vadd.f32 %v285_v63, %v2422_v50  ;;  %vm589_vm8 = vcmp.gt.f32.partialorder %v588_v60, 0.0  ;;  %v590_v18 = vmul.f32 0.2, %v588_v60  ;;  %v540_v19 = vsel %vm538_vm7, %v537_v52, %v539_v14 }
 0x1cf   :  { %v491_v11 = vsel %vm238_vm4, %v2426_v61, -inf  ;;  %v338_v12 = vsel %vm238_vm4, %v337_v62, -inf  ;;  %v2435_v20 = vadd.f32 %v540_v19, %v2422_v50  ;;  %v237_v22 = vadd.f32 %v236_v15, %v2422_v50 }
 0x1d0   :  { %492 = vmax.xlane.f32.xlu1 %v491_v11  ;;  %339 = vmax.xlane.f32.xlu0 %v338_v12  ;;  %v287_v13 = vsel %vm238_vm4, %v286_v1, -inf  ;;  %v591_v21 = vsel %vm589_vm8, %v588_v60, %v590_v18  ;;  %v386_v25 = vmul.f32 0.2, %v384_v16  ;;  %vm385_vm9 = vcmp.gt.f32.partialorder %v384_v16, 0.0 }
 0x1d1   :  { %288 = vmax.xlane.f32.xlu2 %v287_v13  ;;  %v2439_v24 = vadd.f32 %v591_v21, %v2422_v50  ;;  %v239_v26 = vsel %vm238_vm4, %v237_v22, -inf  ;;  %v431_v33 = vadd.f32 %v430_v30, %v428_v32  ;;  %v434_v34 = vmul.f32 %v433_v31, %v2400_v17 }
 0x1d2   :  { %v387_v27 = vsel %vm385_vm9, %v384_v16, %v386_v25  ;;  %v542_v39 = vsel %vm238_vm4, %v2435_v20, -inf }
 0x1d3   :  { %v388_v28 = vadd.f32 %v387_v27, %v2422_v50  ;;  %v435_v35 = vadd.f32 %v434_v34, %v431_v33  ;;  %v593_v17 = vsel %vm238_vm4, %v2439_v24, -inf }
 0x1d5   :  { %v389_v29 = vsel %vm238_vm4, %v388_v28, -inf  ;;  %v437_v36 = vmul.f32 0.2, %v435_v35  ;;  %vm436_vm10 = vcmp.gt.f32.partialorder %v435_v35, 0.0 }
 0x1d7   :  { %v438_v37 = vsel %vm436_vm10, %v435_v35, %v437_v36 }
 0x1d8   :  { %v439_v38 = vadd.f32 %v438_v37, %v2422_v50 }
 0x1d9   :  { %240 = vmax.xlane.f32.xlu2 %v239_v26 }
 0x1da   :  { %v440_v23 = vsel %vm238_vm4, %v439_v38, -inf }
 0x1e1   :  { %390 = vmax.xlane.f32.xlu2 %v389_v29 }
 0x1e4   :  { %349 = vrot.lane.b32.xlu0 %v2372_v5, %s2240_s2 }
 0x1e9   :  { %400 = vrot.lane.b32.xlu1 %v2372_v5, %s2241_s22 }
 0x1f1   :  { %451 = vrot.lane.b32.xlu1 %v2372_v5, %s2242_s23 }
 0x1f9   :  { %298 = vrot.lane.b32.xlu2 %v2372_v5, %s2243_s10 }
 0x201   :  { %502 = vrot.lane.b32.xlu2 %v2372_v5, %s2244_s24 }
 0x20e   :  { %441 = vmax.xlane.f32.xlu0 %v440_v23 }
 0x22a   :  { %543 = vmax.xlane.f32.xlu2 %v542_v39 }
 0x232   :  { %594 = vmax.xlane.f32.xlu2 %v593_v17 }
 0x243   :  { %v340_v40 = vpop.xlane.xlu0 %339  ;;  %v493_v46 = vpop.xlane.xlu1 %492 }
 0x244   :  { %v289_v41 = vpop.xlane.xlu2 %288  ;;  %v341_v42 = vsub.f32 %v337_v62, %v340_v40  ;;  %v494_v50 = vsub.f32 %v2426_v61, %v493_v46 }
 0x245   :  { %v290_v43 = vsub.f32 %v286_v1, %v289_v41 }
 0x246   :  { %v342_v44 = vmul.f32 1.442695, %v341_v42  ;;  %v495_v55 = vmul.f32 1.442695, %v494_v50 }
 0x247   :  { %v291_v45 = vmul.f32 1.442695, %v290_v43 }
 0x249   :  { %1934 = vpow2.f32 %v291_v45 }
 0x24a   :  { %1936 = vpow2.f32 %v342_v44 }
 0x24c   :  { %v241_v47 = vpop.xlane.xlu2 %240 }
 0x24d   :  { %v242_v48 = vsub.f32 %v237_v22, %v241_v47 }
 0x24f   :  { %v2462_v49 = vpop.eup %1934  ;;  %v243_v51 = vmul.f32 1.442695, %v242_v48 }
 0x250   :  { %v2465_v52 = vpop.eup %1936  ;;  %v293_v53 = vsel %vm238_vm4, %v2462_v49, 0.0 }
 0x251   :  { %1938 = vpow2.f32 %v243_v51  ;;  %294 = vadd.xlane.f32.xlu0 %v293_v53  ;;  %v344_v54 = vsel %vm238_vm4, %v2465_v52, 0.0 }
 0x252   :  { %345 = vadd.xlane.f32.xlu2 %v344_v54  ;;  %1940 = vpow2.f32 %v495_v55 }
 0x254   :  { %v391_v56 = vpop.xlane.xlu2 %390 }
 0x255   :  { %v392_v57 = vsub.f32 %v388_v28, %v391_v56 }
 0x256   :  { %v350_v58 = vpop.permute.xlu0 %349 }
 0x257   :  { %v1939_v59 = vpop.eup %1938  ;;  %v393_v60 = vmul.f32 1.442695, %v392_v57  ;;  %370 = vmatpush.msra.mxu3 %v350_v58 }
 0x258   :  { %v245_v61 = vsel %vm238_vm4, %v1939_v59, 0.0  ;;  %v1941_v0 = vpop.eup %1940 }
 0x259   :  { %1942 = vpow2.f32 %v393_v60  ;;  %246 = vadd.xlane.f32.xlu0 %v245_v61  ;;  %v497_v11 = vsel %vm238_vm4, %v1941_v0, 0.0 }
 0x25b   :  { %v401_v62 = vpop.permute.xlu1 %400 }
 0x25c   :  { %v299_v63 = vpop.permute.xlu2 %298  ;;  %421 = vmatpush.msrb.mxu0 %v401_v62 }
 0x25d   :  { %319 = vmatpush.msra.mxu2 %v299_v63  ;;  %v684_v63 = vld [vmem:[%s2840_s8 + $0x38] sm:$0xff] }
 0x25f   :  { %v1943_v1 = vpop.eup %1942 }
 0x260   :  { %v395_v12 = vsel %vm238_vm4, %v1943_v1, 0.0 }
 0x261   :  { %498 = vadd.xlane.f32.xlu0 %v497_v11  ;;  %396 = vadd.xlane.f32.xlu2 %v395_v12  ;;  %v681_v11 = vld [vmem:[%s2840_s8 + $0x20] sm:$0xff]  ;;  %v680_v12 = vld [vmem:[%s2840_s8 + $0x18] sm:$0xff] }
 0x263   :  { %v452_v13 = vpop.permute.xlu1 %451 }
 0x264   :  { %v503_v14 = vpop.permute.xlu2 %502  ;;  %472 = vmatpush.msrb.mxu1 %v452_v13  ;;  %v679_v13 = vld [vmem:[%s2840_s8 + $0x10] sm:$0xff] }
 0x265   :  { %523 = vmatpush.msrb.mxu2 %v503_v14  ;;  %v678_v14 = vld [vmem:[%s2840_s8 + $0x8] sm:$0xff] }
 0x281   :  { %v442_v15 = vpop.xlane.xlu0 %441 }
 0x282   :  { %v443_v16 = vsub.f32 %v439_v38, %v442_v15  ;;  %v677_v15 = vld [vmem:[%s2840_s8] sm:$0xff] }
 0x284   :  { %v444_v18 = vmul.f32 1.442695, %v443_v16 }
 0x286   :  { %1944 = vpow2.f32 %v444_v18 }
 0x28c   :  { %v1945_v19 = vpop.eup %1944 }
 0x28d   :  { %v446_v21 = vsel %vm238_vm4, %v1945_v19, 0.0 }
 0x28e   :  { %447 = vadd.xlane.f32.xlu2 %v446_v21 }
 0x29d   :  { %v544_v22 = vpop.xlane.xlu2 %543 }
 0x29e   :  { %v545_v25 = vsub.f32 %v2435_v20, %v544_v22 }
 0x2a0   :  { %v546_v26 = vmul.f32 1.442695, %v545_v25 }
 0x2a2   :  { %1946 = vpow2.f32 %v546_v26 }
 0x2a5   :  { %v595_v27 = vpop.xlane.xlu2 %594 }
 0x2a6   :  { %v596_v28 = vsub.f32 %v2439_v24, %v595_v27  ;;  %604 = vrot.lane.b32.xlu2 %v2372_v5, %s2245_s25 }
 0x2a8   :  { %v1947_v29 = vpop.eup %1946  ;;  %v597_v30 = vmul.f32 1.442695, %v596_v28 }
 0x2a9   :  { %v548_v31 = vsel %vm238_vm4, %v1947_v29, 0.0 }
 0x2aa   :  { %1948 = vpow2.f32 %v597_v30  ;;  %549 = vadd.xlane.f32.xlu0 %v548_v31  ;;  %v1929_v30 = vld [vmem:[%s2839_s7] ss:$0 sm:$0xff]  ;;  %s1842_s7 = sld [smem:[#allocation2 + $0x83]] }
 0x2b0   :  { %v1949_v32 = vpop.eup %1948 }
 0x2b1   :  { %v599_v33 = vsel %vm238_vm4, %v1949_v32, 0.0 }
 0x2b2   :  { %600 = vadd.xlane.f32.xlu0 %v599_v33 }
 0x2c4   :  { %v295_v20 = vpop.xlane.xlu0 %294 }
 0x2c5   :  { %v346_v34 = vpop.xlane.xlu2 %345  ;;  %1950 = vrcp.f32 %v295_v20 }
 0x2c6   :  { %1952 = vrcp.f32 %v346_v34  ;;  %553 = vrot.lane.b32.xlu0 %v2372_v5, %s2246_s12 }
 0x2cb   :  { %v1951_v24 = vpop.eup %1950 }
 0x2cc   :  { %v1953_v35 = vpop.eup %1952  ;;  %v247_v36 = vpop.xlane.xlu0 %246  ;;  %v297_v37 = vmul.f32 %v1951_v24, %v2462_v49 }
 0x2cd   :  { %1954 = vrcp.f32 %v247_v36  ;;  %v348_v38 = vmul.f32 %v1953_v35, %v2465_v52 }
 0x2ce   :  { %1822 = vmatmul.msk.f32.vlgmr.msra.gmra.mxu2 %vm238_vm4, %v297_v37 }
 0x2cf   :  { %1824 = vmatmul.msk.f32.vlgmr.msra.gmra.mxu3 %vm238_vm4, %v348_v38  ;;  %v2559_v38 = vld [vmem:[%s2837_s5] sm:$0xff]  ;;  %s1867_s5 = sld [smem:[#allocation2 + $0x107]] }
 0x2d3   :  { %v1955_v23 = vpop.eup %1954 }
 0x2d4   :  { %v397_v39 = vpop.xlane.xlu2 %396  ;;  %v499_v17 = vpop.xlane.xlu0 %498  ;;  %v249_v40 = vmul.f32 %v1955_v23, %v1939_v59  ;;  %v902_v23 = vstv %s1842_s7  ;;  %s1857_s7 = sld [smem:[#allocation2 + $0x102]] }
 0x2d5   :  { %1956 = vrcp.f32 %v397_v39 }
 0x2d6   :  { %1958 = vrcp.f32 %v499_v17  ;;  %1820 = vmatmul.msk.f32.vlgmr.msra.gmra.mxu1 %vm238_vm4, %v249_v40  ;;  %v752_v17 = vstv %s1836_s21  ;;  %s1855_s21 = sld [smem:[#allocation2 + $0x101]] }
 0x2d7   :  { %697 = vmatpush.msra.mxu1 %v684_v63 }
 0x2db   :  { %v1957_v5 = vpop.eup %1956 }
 0x2dc   :  { %v1959_v41 = vpop.eup %1958  ;;  %v399_v42 = vmul.f32 %v1957_v5, %v1943_v1  ;;  %v682_v1 = vld [vmem:[%s2840_s8 + $0x28] sm:$0xff] }
 0x2dd   :  { %v501_v43 = vmul.f32 %v1959_v41, %v1941_v0  ;;  %v683_v0 = vld [vmem:[%s2840_s8 + $0x30] sm:$0xff]  ;;  %s2858_s8 = smov 48  }
 0x2de   :  { %1826 = vmatmul.msk.f32.vlgmr.msrb.gmra.mxu0 %vm238_vm4, %v399_v42  ;;  %698 = vmatpush.msra.mxu1 %v683_v0 }
 0x2df   :  { %1830 = vmatmul.msk.f32.vlgmr.msrb.gmra.mxu2 %vm238_vm4, %v501_v43  ;;  %v753_v43 = vmul.f32 %v752_v17, %v2559_v38 }
 0x2e0   :  { %699 = vmatpush.msra.mxu1 %v682_v1 }
 0x2e2   :  { %700 = vmatpush.msra.mxu1 %v681_v11 }
 0x2e4   :  { %701 = vmatpush.msra.mxu1 %v680_v12 }
 0x2e6   :  { %702 = vmatpush.msra.mxu1 %v679_v13 }
 0x2e8   :  { %703 = vmatpush.msra.mxu1 %v678_v14 }
 0x2ea   :  { %704 = vmatpush.msra.mxu1 %v677_v15 }
 0x301   :  { %v448_v44 = vpop.xlane.xlu2 %447 }
 0x302   :  { %1960 = vrcp.f32 %v448_v44 }
 0x308   :  { %v1961_v45 = vpop.eup %1960 }
 0x309   :  { %v605_v46 = vpop.permute.xlu2 %604  ;;  %v450_v47 = vmul.f32 %v1961_v45, %v1945_v19 }
 0x30a   :  { %625 = vmatpush.msra.mxu0 %v605_v46 }
 0x30b   :  { %1828 = vmatmul.msk.f32.vlgmr.msrb.gmra.mxu1 %vm238_vm4, %v450_v47 }
 0x31d   :  { %v550_v48 = vpop.xlane.xlu0 %549 }
 0x325   :  { %v601_v49 = vpop.xlane.xlu0 %600 }
 0x326   :  { %1962 = vrcp.f32 %v601_v49 }
 0x327   :  { %1964 = vrcp.f32 %v550_v48 }
 0x32c   :  { %v1963_v50 = vpop.eup %1962 }
 0x32d   :  { %v603_v51 = vmul.f32 %v1963_v50, %v1949_v32  ;;  %v1965_v52 = vpop.eup %1964 }
 0x32e   :  { %v552_v54 = vmul.f32 %v1965_v52, %v1947_v29  ;;  %v2572_v52 = vld [vmem:[%s2836_s4] sm:$0xff]  ;;  %s1840_s4 = sld [smem:[#allocation2 + $0x82]] }
 0x32f   :  { %1834 = vmatmul.msk.f32.vlgmr.msra.gmra.mxu0 %vm238_vm4, %v603_v51 }
 0x334   :  { %v851_v12 = vstv %s1840_s4 }
 0x335   :  { %v852_v14 = vmul.f32 %v851_v12, %v2559_v38 }
 0x338   :  { %v554_v53 = vpop.permute.xlu0 %553 }
 0x339   :  { %574 = vmatpush.msrb.mxu3 %v554_v53 }
 0x33a   :  { %1832 = vmatmul.msk.f32.vlgmr.msrb.gmra.mxu3 %vm238_vm4, %v552_v54 }
 0x351   :  { %v321_v55 = vpop.f32.mrf.mxu2 }
 0x352   :  { %v372_v56 = vpop.f32.mrf.mxu3  ;;  %631 = vrot.lane.b32.xlu0 %v321_v55, %s2228_s20 }
 0x353   :  { %635 = vrot.lane.b32.xlu1 %v372_v56, %s2247_s14  ;;  %v270_v59 = vpop.f32.mrf.mxu1 }
 0x35b   :  { %v423_v57 = vpop.f32.mrf.mxu0 }
 0x35c   :  { %639 = vrot.lane.b32.xlu2 %v423_v57, %s2248_s27 }
 0x362   :  { %v525_v58 = vpop.f32.mrf.mxu2 }
 0x363   :  { %647 = vrot.lane.b32.xlu1 %v525_v58, %s2850_s26  ;;  %s2859_s26 = smov 40  }
 0x388   :  { %v474_v60 = vpop.f32.mrf.mxu1 }
 0x389   :  { %643 = vrot.lane.b32.xlu0 %v474_v60, %s2250_s28 }
 0x3ac   :  { %v627_v61 = vpop.f32.mrf.mxu0 }
 0x3ad   :  { %655 = vrot.lane.b32.xlu0 %v627_v61, %s2251_s29 }
 0x3b6   :  { %v640_v18 = vpop.permute.xlu2 %639 }
 0x3bd   :  { %v576_v62 = vpop.f32.mrf.mxu3 }
 0x3be   :  { %651 = vrot.lane.b32.xlu2 %v576_v62, %s2852_s0  ;;  %s1838_s0 = sld [smem:[#allocation2 + $0x81]] }
 0x3c4   :  { %v632_v16 = vpop.permute.xlu0 %631  ;;  %v800_v39 = vstv %s1838_s0  ;;  %s1853_s0 = sld [smem:[#allocation2 + $0x100]] }
 0x3c5   :  { %v636_v19 = vpop.permute.xlu1 %635  ;;  %v658_v21 = vsel %vm238_vm4, %v270_v59, %v632_v16  ;;  %v801_v5 = vmul.f32 %v800_v39, %v2559_v38  ;;  %v953_v16 = vstv %s1844_s19 }
 0x3c6   :  { %v660_v22 = vsel %vm659_vm11, %v658_v21, %v636_v19 }
 0x3c7   :  { %v662_v26 = vsel %vm661_vm12, %v660_v22, %v640_v18  ;;  %v954_v18 = vmul.f32 %v953_v16, %v2559_v38 }
 0x3d5   :  { %v648_v29 = vpop.permute.xlu1 %647 }
 0x3fb   :  { %v644_v25 = vpop.permute.xlu0 %643 }
 0x3fc   :  { %v664_v27 = vsel %vm663_vm13, %v662_v26, %v644_v25  ;;  %v1106_v25 = vstv %s1850_s1 }
 0x3fd   :  { %v666_v31 = vsel %vm665_vm14, %v664_v27, %v648_v29  ;;  %v1107_v27 = vmul.f32 %v1106_v25, %v2559_v38 }
 0x418   :  { %v652_v28 = vpop.permute.xlu2 %651 }
 0x419   :  { %v668_v32 = vsel %vm667_vm15, %v666_v31, %v652_v28  ;;  %v1004_v28 = vstv %s1846_s6 }
 0x41f   :  { %v656_v33 = vpop.permute.xlu0 %655 }
 0x420   :  { %v670_v20 = vsel %vm669_vm0, %v668_v32, %v656_v33 }
 0x421   :  { %v675_v34 = vadd.f32 %v1929_v30, %v670_v20  ;;  %v1005_v20 = vmul.f32 %v1004_v28, %v2559_v38 }
 0x423   :  { %v676_v24 = vmax.f32 %v675_v34, 0.0 }
 0x425   :  { %1835 = vmatmul.msk.f32.vlgmr.msra.gmra.mxu1 %vm685_vm1, %v676_v24  ;;  %v1055_v24 = vstv %s1848_s3 }
 0x4a2   :  { %v2535_v35 = vpop.f32.mrf.mxu1 }
 0x4a3   :  { %794 = vperm.xlu0 %1914, %v2535_v35   ;;  %746 = vperm.xlu2 %1913, %v2535_v35  }
 0x4a4   :  { %710 = vrot.lane.b32.xlu1 %v2535_v35, %s2234_s11  ;;  %788 = vmatpush.msra.mxu2 %v2535_v35 }
 0x4ab   :  { %1919 = vset.pattern.permute.xlu0 %v2235_v6  ;;  %1916 = vset.pattern.permute.xlu2 %v2232_v3 }
 0x4ac   :  { %896 = vperm.xlu1 %1915, %v2535_v35   ;;  %998 = vperm.xlu0 %1919, %v2535_v35  }
 0x4ad   :  { %845 = vperm.xlu2 %1916, %v2535_v35  }
 0x4b4   :  { %1917 = vset.pattern.permute.xlu1 %v2238_v9  ;;  %1923 = vset.pattern.permute.xlu0 %v2233_v4 }
 0x4b5   :  { %1918 = vset.pattern.permute.xlu2 %v2237_v8  ;;  %947 = vperm.xlu1 %1917, %v2535_v35  }
 0x4b6   :  { %1100 = vperm.xlu2 %1918, %v2535_v35  }
 0x4be   :  { %1920 = vset.pattern.permute.xlu2 %v2239_v10 }
 0x4bf   :  { %1049 = vperm.xlu2 %1920, %v2535_v35  }
 0x4c7   :  { %1922 = vset.pattern.permute.xlu2 %v2232_v3  ;;  %v903_v3 = vmul.f32 %v902_v23, %v2559_v38 }
 0x4fd   :  { %v747_v44 = vpop.permute.xlu2 %746 }
 0x507   :  { %v846_v1 = vpop.permute.xlu2 %845 }
 0x510   :  { %v1101_v26 = vpop.permute.xlu2 %1100 }
 0x515   :  { %v795_v45 = vpop.permute.xlu0 %794 }
 0x516   :  { %v711_v36 = vpop.permute.xlu1 %710 }
 0x517   :  { %713 = vxpose.xlu1.b32.start.end [1/1] (short) (narrow) %v711_v36, 8 }
 0x519   :  { %v1050_v39 = vpop.permute.xlu2 %1049 }
 0x51e   :  { %v897_v37 = vpop.permute.xlu1 %896  ;;  %v999_v33 = vpop.permute.xlu0 %998 }
 0x527   :  { %v948_v4 = vpop.permute.xlu1 %947 }
 0x56a   :  { %1921 = vset.pattern.permute.xlu1 %v2236_v7 }
 0x5bb   :  { %v2561_v40 = vpop.trf.xlu1 }
 0x5bc   :  { %v899_v7 = vperm.slane %v2561_v40, 3  ;;  %v797_v41 = vperm.slane %v2561_v40, 1  ;;  %v749_v42 = vperm.slane %v2561_v40, 0  ;;  %v848_v11 = vperm.slane %v2561_v40, 2 }
 0x5bd   :  { %v950_v15 = vperm.slane %v2561_v40, 4  ;;  %v1103_v22 = vperm.slane %v2561_v40, 7  ;;  %v1001_v32 = vperm.slane %v2561_v40, 5  ;;  %v1052_v34 = vperm.slane %v2561_v40, 6 }
 0x5be   :  { %v900_v46 = vadd.f32 %v899_v7, %v897_v37  ;;  %v798_v47 = vadd.f32 %v797_v41, %v795_v45  ;;  %v750_v48 = vadd.f32 %v749_v42, %v747_v44  ;;  %v849_v13 = vadd.f32 %v848_v11, %v846_v1 }
 0x5bf   :  { %v951_v21 = vadd.f32 %v950_v15, %v948_v4  ;;  %v1104_v31 = vadd.f32 %v1103_v22, %v1101_v26  ;;  %v1002_v23 = vadd.f32 %v1001_v32, %v999_v33  ;;  %v1053_v42 = vadd.f32 %v1052_v34, %v1050_v39 }
 0x5c0   :  { %v904_v49 = vadd.f32 %v903_v3, %v900_v46  ;;  %v802_v50 = vadd.f32 %v801_v5, %v798_v47  ;;  %v754_v51 = vadd.f32 %v753_v43, %v750_v48  ;;  %v853_v19 = vadd.f32 %v852_v14, %v849_v13 }
 0x5c1   :  { %v955_v30 = vadd.f32 %v954_v18, %v951_v21  ;;  %v1108_v4 = vadd.f32 %v1107_v27, %v1104_v31  ;;  %v1056_v3 = vmul.f32 %v1055_v24, %v2559_v38  ;;  %v1006_v41 = vadd.f32 %v1005_v20, %v1002_v23 }
 0x5c2   :  { %vm905_vm2 = vcmp.gt.f32.partialorder %v904_v49, 0.0  ;;  %v906_v53 = vmul.f32 0.2, %v904_v49  ;;  %vm803_vm3 = vcmp.gt.f32.partialorder %v802_v50, 0.0  ;;  %v804_v54 = vmul.f32 0.2, %v802_v50 }
 0x5c3   :  { %vm755_vm5 = vcmp.gt.f32.partialorder %v754_v51, 0.0  ;;  %v756_v55 = vmul.f32 0.2, %v754_v51  ;;  %v855_v29 = vmul.f32 0.2, %v853_v19  ;;  %vm854_vm6 = vcmp.gt.f32.partialorder %v853_v19, 0.0 }
 0x5c4   :  { %v907_v56 = vsel %vm905_vm2, %v904_v49, %v906_v53  ;;  %v805_v57 = vsel %vm803_vm3, %v802_v50, %v804_v54  ;;  %v957_v37 = vmul.f32 0.2, %v955_v30  ;;  %vm956_vm7 = vcmp.gt.f32.partialorder %v955_v30, 0.0 }
 0x5c5   :  { %v2575_v58 = vadd.f32 %v907_v56, %v2572_v52  ;;  %v2578_v59 = vadd.f32 %v805_v57, %v2572_v52  ;;  %v757_v60 = vsel %vm755_vm5, %v754_v51, %v756_v55  ;;  %v856_v36 = vsel %vm854_vm6, %v853_v19, %v855_v29 }
 0x5c6   :  { %v2581_v61 = vadd.f32 %v757_v60, %v2572_v52  ;;  %v857_v17 = vadd.f32 %v856_v36, %v2572_v52  ;;  %v958_v5 = vsel %vm956_vm7, %v955_v30, %v957_v37  ;;  %v1110_v7 = vmul.f32 0.2, %v1108_v4 }
 0x5c7   :  { %v909_v62 = vsel %vm238_vm4, %v2575_v58, -inf  ;;  %v807_v63 = vsel %vm238_vm4, %v2578_v59, -inf  ;;  %vm1109_vm8 = vcmp.gt.f32.partialorder %v1108_v4, 0.0  ;;  %v959_v40 = vadd.f32 %v958_v5, %v2572_v52 }
 0x5c8   :  { %910 = vmax.xlane.f32.xlu1 %v909_v62  ;;  %808 = vmax.xlane.f32.xlu0 %v807_v63  ;;  %v759_v0 = vsel %vm238_vm4, %v2581_v61, -inf  ;;  %v858_v43 = vsel %vm238_vm4, %v857_v17, -inf  ;;  %v1111_v44 = vsel %vm1109_vm8, %v1108_v4, %v1110_v7  ;;  %v1008_v45 = vmul.f32 0.2, %v1006_v41 }
 0x5c9   :  { %760 = vmax.xlane.f32.xlu2 %v759_v0  ;;  %v1057_v46 = vadd.f32 %v1056_v3, %v1053_v42  ;;  %vm1007_vm9 = vcmp.gt.f32.partialorder %v1006_v41, 0.0  ;;  %v960_v47 = vsel %vm238_vm4, %v959_v40, -inf  ;;  %v1112_v48 = vadd.f32 %v1111_v44, %v2572_v52 }
 0x5ca   :  { %v1009_v49 = vsel %vm1007_vm9, %v1006_v41, %v1008_v45 }
 0x5cb   :  { %v1059_v50 = vmul.f32 0.2, %v1057_v46  ;;  %vm1058_vm10 = vcmp.gt.f32.partialorder %v1057_v46, 0.0  ;;  %v1113_v51 = vsel %vm238_vm4, %v1112_v48, -inf  ;;  %v1010_v53 = vadd.f32 %v1009_v49, %v2572_v52 }
 0x5cd   :  { %v1060_v54 = vsel %vm1058_vm10, %v1057_v46, %v1059_v50  ;;  %v1011_v55 = vsel %vm238_vm4, %v1010_v53, -inf }
 0x5ce   :  { %v1061_v56 = vadd.f32 %v1060_v54, %v2572_v52 }
 0x5d0   :  { %v1062_v57 = vsel %vm238_vm4, %v1061_v56, -inf }
 0x5dc   :  { %920 = vrot.lane.b32.xlu0 %v2535_v35, %s2241_s22 }
 0x5e1   :  { %818 = vrot.lane.b32.xlu2 %v2535_v35, %s2243_s10  ;;  %971 = vrot.lane.b32.xlu1 %v2535_v35, %s2242_s23 }
 0x5e4   :  { %869 = vrot.lane.b32.xlu0 %v2535_v35, %s2240_s2 }
 0x5e9   :  { %1073 = vrot.lane.b32.xlu1 %v2535_v35, %s2246_s12 }
 0x60a   :  { %859 = vmax.xlane.f32.xlu2 %v858_v43 }
 0x60e   :  { %961 = vmax.xlane.f32.xlu0 %v960_v47 }
 0x612   :  { %1114 = vmax.xlane.f32.xlu2 %v1113_v51 }
 0x616   :  { %1012 = vmax.xlane.f32.xlu0 %v1011_v55 }
 0x61a   :  { %1063 = vmax.xlane.f32.xlu2 %v1062_v57 }
 0x63b   :  { %v809_v60 = vpop.xlane.xlu0 %808  ;;  %v911_v0 = vpop.xlane.xlu1 %910 }
 0x63c   :  { %v810_v62 = vsub.f32 %v2578_v59, %v809_v60  ;;  %v761_v63 = vpop.xlane.xlu2 %760  ;;  %v912_v13 = vsub.f32 %v2575_v58, %v911_v0 }
 0x63d   :  { %v762_v1 = vsub.f32 %v2581_v61, %v761_v63 }
 0x63e   :  { %v811_v11 = vmul.f32 1.442695, %v810_v62  ;;  %v913_v14 = vmul.f32 1.442695, %v912_v13 }
 0x63f   :  { %v763_v12 = vmul.f32 1.442695, %v762_v1 }
 0x640   :  { %1966 = vpow2.f32 %v811_v11 }
 0x641   :  { %1968 = vpow2.f32 %v763_v12 }
 0x642   :  { %1970 = vpow2.f32 %v913_v14 }
 0x644   :  { %v819_v15 = vpop.permute.xlu2 %818 }
 0x645   :  { %839 = vmatpush.msra.mxu3 %v819_v15 }
 0x646   :  { %v1967_v16 = vpop.eup %1966 }
 0x647   :  { %v1969_v18 = vpop.eup %1968  ;;  %v813_v19 = vsel %vm238_vm4, %v1967_v16, 0.0 }
 0x648   :  { %814 = vadd.xlane.f32.xlu2 %v813_v19  ;;  %v765_v59 = vsel %vm238_vm4, %v1969_v18, 0.0  ;;  %v1971_v21 = vpop.eup %1970 }
 0x649   :  { %766 = vadd.xlane.f32.xlu0 %v765_v59  ;;  %v915_v22 = vsel %vm238_vm4, %v1971_v21, 0.0 }
 0x64e   :  { %v921_v61 = vpop.permute.xlu0 %920 }
 0x64f   :  { %941 = vmatpush.msrb.mxu2 %v921_v61 }
 0x651   :  { %916 = vadd.xlane.f32.xlu0 %v915_v22 }
 0x653   :  { %v972_v58 = vpop.permute.xlu1 %971 }
 0x654   :  { %992 = vmatpush.msrb.mxu3 %v972_v58 }
 0x656   :  { %v870_v25 = vpop.permute.xlu0 %869 }
 0x657   :  { %890 = vmatpush.msrb.mxu0 %v870_v25 }
 0x65b   :  { %v1074_v26 = vpop.permute.xlu1 %1073 }
 0x65c   :  { %1094 = vmatpush.msrb.mxu1 %v1074_v26 }
 0x67d   :  { %v860_v27 = vpop.xlane.xlu2 %859 }
 0x67e   :  { %v861_v28 = vsub.f32 %v857_v17, %v860_v27 }
 0x680   :  { %v862_v29 = vmul.f32 1.442695, %v861_v28 }
 0x681   :  { %v962_v30 = vpop.xlane.xlu0 %961 }
 0x682   :  { %1972 = vpow2.f32 %v862_v29  ;;  %v963_v31 = vsub.f32 %v959_v40, %v962_v30  ;;  %v1198_v29 = vld [vmem:[#allocation9 + $0x38] sm:$0xff]  ;;  %v1197_v30 = vld [vmem:[#allocation9 + $0x30] sm:$0xff] }
 0x684   :  { %v964_v32 = vmul.f32 1.442695, %v963_v31  ;;  %v1196_v31 = vld [vmem:[#allocation9 + $0x28] sm:$0xff] }
 0x685   :  { %v1115_v33 = vpop.xlane.xlu2 %1114 }
 0x686   :  { %1974 = vpow2.f32 %v964_v32  ;;  %v1116_v20 = vsub.f32 %v1112_v48, %v1115_v33  ;;  %v1195_v32 = vld [vmem:[#allocation9 + $0x20] sm:$0xff]  ;;  %v1194_v33 = vld [vmem:[#allocation9 + $0x18] sm:$0xff] }
 0x688   :  { %v1973_v34 = vpop.eup %1972  ;;  %v1117_v24 = vmul.f32 1.442695, %v1116_v20  ;;  %v1193_v20 = vld [vmem:[#allocation9 + $0x10] sm:$0xff] }
 0x689   :  { %v1013_v36 = vpop.xlane.xlu0 %1012  ;;  %v864_v37 = vsel %vm238_vm4, %v1973_v34, 0.0 }
 0x68a   :  { %v1014_v4 = vsub.f32 %v1010_v53, %v1013_v36  ;;  %865 = vadd.xlane.f32.xlu2 %v864_v37  ;;  %1976 = vpow2.f32 %v1117_v24  ;;  %v1191_v24 = vld [vmem:[#allocation9] sm:$0xff] }
 0x68c   :  { %v1975_v23 = vpop.eup %1974  ;;  %v1015_v39 = vmul.f32 1.442695, %v1014_v4 }
 0x68d   :  { %v1064_v3 = vpop.xlane.xlu2 %1063  ;;  %v966_v17 = vsel %vm238_vm4, %v1975_v23, 0.0 }
 0x68e   :  { %1978 = vpow2.f32 %v1015_v39  ;;  %v1065_v5 = vsub.f32 %v1061_v56, %v1064_v3  ;;  %967 = vadd.xlane.f32.xlu0 %v966_v17 }
 0x690   :  { %v1066_v7 = vmul.f32 1.442695, %v1065_v5  ;;  %v1977_v41 = vpop.eup %1976 }
 0x691   :  { %v1119_v40 = vsel %vm238_vm4, %v1977_v41, 0.0 }
 0x692   :  { %1980 = vpow2.f32 %v1066_v7  ;;  %v1930_v7 = vld [vmem:[#allocation7] ss:$0 sm:$0xff] }
 0x694   :  { %v1979_v42 = vpop.eup %1978 }
 0x695   :  { %v1017_v43 = vsel %vm238_vm4, %v1979_v42, 0.0 }
 0x696   :  { %1018 = vadd.xlane.f32.xlu2 %v1017_v43  ;;  %1120 = vadd.xlane.f32.xlu0 %v1119_v40 }
 0x698   :  { %v1981_v44 = vpop.eup %1980 }
 0x699   :  { %v1068_v45 = vsel %vm238_vm4, %v1981_v44, 0.0 }
 0x69e   :  { %1069 = vadd.xlane.f32.xlu0 %v1068_v45 }
 0x6ae   :  { %1124 = vrot.lane.b32.xlu2 %v2535_v35, %s2245_s25 }
 0x6b2   :  { %1022 = vrot.lane.b32.xlu0 %v2535_v35, %s2244_s24 }
 0x6bb   :  { %v815_v46 = vpop.xlane.xlu2 %814 }
 0x6bc   :  { %v767_v47 = vpop.xlane.xlu0 %766  ;;  %1982 = vrcp.f32 %v815_v46 }
 0x6bd   :  { %1984 = vrcp.f32 %v767_v47 }
 0x6c2   :  { %v1983_v48 = vpop.eup %1982 }
 0x6c3   :  { %v1985_v49 = vpop.eup %1984  ;;  %v817_v50 = vmul.f32 %v1983_v48, %v1967_v16 }
 0x6c4   :  { %v769_v51 = vmul.f32 %v1985_v49, %v1969_v18  ;;  %v917_v53 = vpop.xlane.xlu0 %916 }
 0x6c5   :  { %1986 = vrcp.f32 %v917_v53  ;;  %1839 = vmatmul.msk.f32.vlgmr.msra.gmra.mxu3 %vm238_vm4, %v817_v50  ;;  %v1313_v53 = vstv %s1855_s21 }
 0x6c6   :  { %1837 = vmatmul.msk.f32.vlgmr.msra.gmra.mxu2 %vm238_vm4, %v769_v51  ;;  %1210 = vmatpush.msra.mxu3 %v1198_v29  ;;  %v1364_v51 = vstv %s1857_s7 }
 0x6c8   :  { %1211 = vmatpush.msra.mxu3 %v1197_v30 }
 0x6ca   :  { %1212 = vmatpush.msra.mxu3 %v1196_v31 }
 0x6cb   :  { %v1987_v54 = vpop.eup %1986 }
 0x6cc   :  { %v919_v55 = vmul.f32 %v1987_v54, %v1971_v21  ;;  %1213 = vmatpush.msra.mxu3 %v1195_v32 }
 0x6ce   :  { %1843 = vmatmul.msk.f32.vlgmr.msrb.gmra.mxu2 %vm238_vm4, %v919_v55  ;;  %1214 = vmatpush.msra.mxu3 %v1194_v33 }
 0x6d0   :  { %1215 = vmatpush.msra.mxu3 %v1193_v20 }
 0x6fd   :  { %v866_v56 = vpop.xlane.xlu2 %865 }
 0x6fe   :  { %1988 = vrcp.f32 %v866_v56  ;;  %v1365_v56 = vmul.f32 %v1364_v51, %v2559_v38 }
 0x701   :  { %v968_v35 = vpop.xlane.xlu0 %967 }
 0x702   :  { %1990 = vrcp.f32 %v968_v35 }
 0x704   :  { %v1989_v57 = vpop.eup %1988 }
 0x705   :  { %v868_v60 = vmul.f32 %v1989_v57, %v1973_v34  ;;  %v1192_v34 = vld [vmem:[#allocation9 + $0x8] sm:$0xff] }
 0x706   :  { %1216 = vmatpush.msra.mxu3 %v1192_v34 }
 0x707   :  { %1841 = vmatmul.msk.f32.vlgmr.msrb.gmra.mxu0 %vm238_vm4, %v868_v60 }
 0x708   :  { %v1991_v62 = vpop.eup %1990  ;;  %1217 = vmatpush.msra.mxu3 %v1191_v24 }
 0x709   :  { %v970_v63 = vmul.f32 %v1991_v62, %v1975_v23  ;;  %v1121_v0 = vpop.xlane.xlu0 %1120  ;;  %v1019_v1 = vpop.xlane.xlu2 %1018 }
 0x70a   :  { %1992 = vrcp.f32 %v1121_v0 }
 0x70b   :  { %1845 = vmatmul.msk.f32.vlgmr.msrb.gmra.mxu3 %vm238_vm4, %v970_v63 }
 0x710   :  { %v1993_v11 = vpop.eup %1992 }
 0x711   :  { %v1123_v12 = vmul.f32 %v1993_v11, %v1977_v41  ;;  %v1070_v13 = vpop.xlane.xlu0 %1069  ;;  %v1125_v14 = vpop.permute.xlu2 %1124  ;;  %v1314_v11 = vmul.f32 %v1313_v53, %v2559_v38 }
 0x712   :  { %1994 = vrcp.f32 %v1070_v13  ;;  %1145 = vmatpush.msra.mxu2 %v1125_v14 }
 0x713   :  { %1851 = vmatmul.msk.f32.vlgmr.msra.gmra.mxu2 %vm238_vm4, %v1123_v12  ;;  %1996 = vrcp.f32 %v1019_v1 }
 0x718   :  { %v1995_v15 = vpop.eup %1994 }
 0x719   :  { %v1072_v16 = vmul.f32 %v1995_v15, %v1981_v44  ;;  %v1997_v18 = vpop.eup %1996 }
 0x71a   :  { %v1021_v19 = vmul.f32 %v1997_v18, %v1979_v42 }
 0x71b   :  { %1849 = vmatmul.msk.f32.vlgmr.msrb.gmra.mxu1 %vm238_vm4, %v1072_v16 }
 0x724   :  { %v1023_v59 = vpop.permute.xlu0 %1022 }
 0x725   :  { %1043 = vmatpush.msra.mxu0 %v1023_v59 }
 0x726   :  { %1847 = vmatmul.msk.f32.vlgmr.msra.gmra.mxu0 %vm238_vm4, %v1021_v19 }
 0x748   :  { %v841_v21 = vpop.f32.mrf.mxu3 }
 0x749   :  { %v790_v61 = vpop.f32.mrf.mxu2  ;;  %1151 = vrot.lane.b32.xlu1 %v841_v21, %s2228_s20 }
 0x751   :  { %v943_v22 = vpop.f32.mrf.mxu2 }
 0x752   :  { %1159 = vrot.lane.b32.xlu1 %v943_v22, %s2248_s27 }
 0x784   :  { %v892_v58 = vpop.f32.mrf.mxu0 }
 0x785   :  { %1155 = vrot.lane.b32.xlu2 %v892_v58, %s2247_s14 }
 0x78e   :  { %v994_v25 = vpop.f32.mrf.mxu3 }
 0x78f   :  { %1163 = vrot.lane.b32.xlu2 %v994_v25, %s2250_s28 }
 0x796   :  { %v1147_v26 = vpop.f32.mrf.mxu2 }
 0x797   :  { %1175 = vrot.lane.b32.xlu2 %v1147_v26, %s2251_s29 }
 0x798   :  { %v1096_v27 = vpop.f32.mrf.mxu1 }
 0x799   :  { %1171 = vrot.lane.b32.xlu1 %v1096_v27, %s2858_s8 }
 0x7a3   :  { %v1045_v28 = vpop.f32.mrf.mxu0 }
 0x7a4   :  { %1167 = vrot.lane.b32.xlu0 %v1045_v28, %s2859_s26 }
 0x7bb   :  { %v1152_v36 = vpop.permute.xlu1 %1151 }
 0x7bc   :  { %v1178_v39 = vsel %vm238_vm4, %v790_v61, %v1152_v36  ;;  %v1415_v61 = vstv %s2677_s9 }
 0x7bd   :  { %v1416_v29 = vmul.f32 %v1415_v61, %v2559_v38 }
 0x7c4   :  { %v1160_v23 = vpop.permute.xlu1 %1159 }
 0x7df   :  { %v1156_v37 = vpop.permute.xlu2 %1155 }
 0x7e0   :  { %v1179_v3 = vsel %vm659_vm11, %v1178_v39, %v1156_v37 }
 0x7e1   :  { %v1180_v17 = vsel %vm661_vm12, %v1179_v3, %v1160_v23 }
 0x7e9   :  { %v1164_v4 = vpop.permute.xlu2 %1163 }
 0x7ea   :  { %v1181_v5 = vsel %vm663_vm13, %v1180_v17, %v1164_v4 }
 0x7f1   :  { %v1176_v40 = vpop.permute.xlu2 %1175 }
 0x80b   :  { %v1172_v42 = vpop.permute.xlu1 %1171 }
 0x816   :  { %v1168_v41 = vpop.permute.xlu0 %1167 }
 0x817   :  { %v1182_v43 = vsel %vm665_vm14, %v1181_v5, %v1168_v41 }
 0x818   :  { %v1183_v44 = vsel %vm667_vm15, %v1182_v43, %v1172_v42  ;;  %v1568_v42 = vstv %s1865_s18 }
 0x819   :  { %v1184_v45 = vsel %vm669_vm0, %v1183_v44, %v1176_v40  ;;  %v1569_v40 = vmul.f32 %v1568_v42, %v2559_v38 }
 0x81a   :  { %v1189_v46 = vadd.f32 %v1930_v7, %v1184_v45 }
 0x81c   :  { %v1190_v47 = vmax.f32 %v1189_v46, 0.0  ;;  %v1619_v46 = vstv %s1867_s5  ;;  %s2253_s5 = smov [#allocation15]  }
 0x81e   :  { %1852 = vmatmul.msk.f32.vlgmr.msra.gmra.mxu3 %vm685_vm1, %v1190_v47 }
 0x8a1   :  { %v2657_v48 = vpop.f32.mrf.mxu3 }
 0x8a2   :  { %1358 = vperm.xlu2 %1922, %v2657_v48   ;;  %1259 = vperm.xlu1 %1921, %v2657_v48  }
 0x8a3   :  { %1223 = vrot.lane.b32.xlu0 %v2657_v48, %s2234_s11  ;;  %1301 = vmatpush.msrb.mxu0 %v2657_v48  ;;  %s1863_s11 = sld [smem:[#allocation2 + $0x105]] }
 0x8aa   :  { %1925 = vset.pattern.permute.xlu2 %v2235_v6  ;;  %1924 = vset.pattern.permute.xlu1 %v2231_v2 }
 0x8ab   :  { %1307 = vperm.xlu0 %1923, %v2657_v48   ;;  %1511 = vperm.xlu2 %1925, %v2657_v48  }
 0x8ac   :  { %1409 = vperm.xlu1 %1924, %v2657_v48  }
 0x8b3   :  { %1928 = vset.pattern.permute.xlu0 %v2237_v8  ;;  %1927 = vset.pattern.permute.xlu2 %v2238_v9  ;;  %v1517_v9 = vstv %s1863_s11 }
 0x8b4   :  { %1926 = vset.pattern.permute.xlu1 %v2239_v10  ;;  %1613 = vperm.xlu0 %1928, %v2657_v48   ;;  %v1265_v10 = vstv %s1853_s0  ;;  %v1518_v55 = vmul.f32 %v1517_v9, %v2559_v38 }
 0x8b5   :  { %1460 = vperm.xlu2 %1927, %v2657_v48   ;;  %1562 = vperm.xlu1 %1926, %v2657_v48   ;;  %v1266_v35 = vmul.f32 %v1265_v10, %v2559_v38 }
 0x8fc   :  { %v1359_v50 = vpop.permute.xlu2 %1358 }
 0x905   :  { %v1512_v0 = vpop.permute.xlu2 %1511 }
 0x914   :  { %v1260_v2 = vpop.permute.xlu1 %1259 }
 0x915   :  { %v1224_v6 = vpop.permute.xlu0 %1223 }
 0x916   :  { %1226 = vxpose.xlu1.b32.start.end [1/1] (short) (narrow) %v1224_v6, 8 }
 0x91d   :  { %v1308_v1 = vpop.permute.xlu0 %1307 }
 0x91e   :  { %v1410_v49 = vpop.permute.xlu1 %1409 }
 0x926   :  { %v1614_v47 = vpop.permute.xlu0 %1613 }
 0x927   :  { %v2675_v8 = vpop.permute.xlu1 %1562 }
 0x9ba   :  { %v2679_v54 = vpop.trf.xlu1 }
 0x9bb   :  { %v1514_v57 = vperm.slane %v2679_v54, 5  ;;  %v1361_v60 = vperm.slane %v2679_v54, 2  ;;  %v1262_v62 = vperm.slane %v2679_v54, 0  ;;  %v1310_v63 = vperm.slane %v2679_v54, 1 }
 0x9bc   :  { %v1412_v59 = vperm.slane %v2679_v54, 3  ;;  %v1565_v41 = vperm.slane %v2679_v54, 6  ;;  %v1616_v45 = vperm.slane %v2679_v54, 7 }
 0x9bd   :  { %v1515_v12 = vadd.f32 %v1514_v57, %v1512_v0  ;;  %v1362_v13 = vadd.f32 %v1361_v60, %v1359_v50  ;;  %v1263_v14 = vadd.f32 %v1262_v62, %v1260_v2  ;;  %v1311_v15 = vadd.f32 %v1310_v63, %v1308_v1  ;;  %v1461_v60 = vpop.permute.xlu2 %1460 }
 0x9be   :  { %v1413_v28 = vadd.f32 %v1412_v59, %v1410_v49  ;;  %v1566_v43 = vadd.f32 %v1565_v41, %v2675_v8  ;;  %v1617_v2 = vadd.f32 %v1616_v45, %v1614_v47  ;;  %v1620_v49 = vmul.f32 %v1619_v46, %v2559_v38 }
 0x9bf   :  { %v1519_v16 = vadd.f32 %v1518_v55, %v1515_v12  ;;  %v1366_v18 = vadd.f32 %v1365_v56, %v1362_v13  ;;  %v1267_v19 = vadd.f32 %v1266_v35, %v1263_v14  ;;  %v1315_v21 = vadd.f32 %v1314_v11, %v1311_v15 }
 0x9c0   :  { %v1417_v4 = vadd.f32 %v1416_v29, %v1413_v28  ;;  %v1570_v44 = vadd.f32 %v1569_v40, %v1566_v43  ;;  %v1621_v9 = vadd.f32 %v1620_v49, %v1617_v2  ;;  %v1463_v35 = vperm.slane %v2679_v54, 4 }
 0x9c1   :  { %vm1520_vm2 = vcmp.gt.f32.partialorder %v1519_v16, 0.0  ;;  %v1521_v22 = vmul.f32 0.2, %v1519_v16  ;;  %vm1367_vm3 = vcmp.gt.f32.partialorder %v1366_v18, 0.0  ;;  %v1368_v58 = vmul.f32 0.2, %v1366_v18 }
 0x9c2   :  { %vm1268_vm5 = vcmp.gt.f32.partialorder %v1267_v19, 0.0  ;;  %v1269_v25 = vmul.f32 0.2, %v1267_v19  ;;  %v1317_v33 = vmul.f32 0.2, %v1315_v21  ;;  %vm1316_vm6 = vcmp.gt.f32.partialorder %v1315_v21, 0.0 }
 0x9c3   :  { %v1522_v26 = vsel %vm1520_vm2, %v1519_v16, %v1521_v22  ;;  %v1369_v27 = vsel %vm1367_vm3, %v1366_v18, %v1368_v58  ;;  %v1419_v39 = vmul.f32 0.2, %v1417_v4  ;;  %vm1418_vm7 = vcmp.gt.f32.partialorder %v1417_v4, 0.0 }
 0x9c4   :  { %v2693_v30 = vadd.f32 %v1522_v26, %v2572_v52  ;;  %v2696_v31 = vadd.f32 %v1369_v27, %v2572_v52  ;;  %v1270_v32 = vsel %vm1268_vm5, %v1267_v19, %v1269_v25  ;;  %v1318_v37 = vsel %vm1316_vm6, %v1315_v21, %v1317_v33 }
 0x9c5   :  { %v2699_v20 = vadd.f32 %v1270_v32, %v2572_v52  ;;  %v2708_v23 = vadd.f32 %v1318_v37, %v2572_v52  ;;  %v1420_v17 = vsel %vm1418_vm7, %v1417_v4, %v1419_v39  ;;  %v1572_v6 = vmul.f32 0.2, %v1570_v44 }
 0x9c6   :  { %v1524_v34 = vsel %vm238_vm4, %v2693_v30, -inf  ;;  %v1371_v24 = vsel %vm238_vm4, %v2696_v31, -inf  ;;  %v2713_v5 = vadd.f32 %v1420_v17, %v2572_v52  ;;  %vm1571_vm8 = vcmp.gt.f32.partialorder %v1570_v44, 0.0 }
 0x9c7   :  { %1525 = vmax.xlane.f32.xlu1 %v1524_v34  ;;  %1372 = vmax.xlane.f32.xlu0 %v1371_v24  ;;  %v1272_v36 = vsel %vm238_vm4, %v2699_v20, -inf  ;;  %v1320_v3 = vsel %vm238_vm4, %v2708_v23, -inf  ;;  %v1573_v50 = vsel %vm1571_vm8, %v1570_v44, %v1572_v6  ;;  %v1623_v51 = vmul.f32 0.2, %v1621_v9 }
 0x9c8   :  { %1273 = vmax.xlane.f32.xlu2 %v1272_v36  ;;  %v1422_v7 = vsel %vm238_vm4, %v2713_v5, -inf  ;;  %v2733_v8 = vadd.f32 %v1573_v50, %v2572_v52  ;;  %vm1622_vm9 = vcmp.gt.f32.partialorder %v1621_v9, 0.0  ;;  %v1464_v62 = vadd.f32 %v1463_v35, %v1461_v60 }
 0x9c9   :  { %v1624_v53 = vsel %vm1622_vm9, %v1621_v9, %v1623_v51 }
 0x9ca   :  { %v1575_v10 = vsel %vm238_vm4, %v2733_v8, -inf  ;;  %v2738_v55 = vadd.f32 %v1624_v53, %v2572_v52 }
 0x9cc   :  { %v1626_v56 = vsel %vm238_vm4, %v2738_v55, -inf }
 0x9d0   :  { %1321 = vmax.xlane.f32.xlu2 %v1320_v3 }
 0x9d8   :  { %1423 = vmax.xlane.f32.xlu2 %v1422_v7 }
 0x9db   :  { %1382 = vrot.lane.b32.xlu0 %v2657_v48, %s2240_s2  ;;  %s1861_s2 = sld [smem:[#allocation2 + $0x104]] }
 0x9e0   :  { %1637 = vrot.lane.b32.xlu1 %v2657_v48, %s2245_s25 }
 0x9e1   :  { %v1466_v57 = vstv %s1861_s2  ;;  %s1802_s2 = sshll.u32 %s2253_s5, 4  ;;  %s1803_s2 = int_to_ptr.vmem [resolvable:$true] %s1802_s2 }
 0x9e2   :  { %v1467_v63 = vmul.f32 %v1466_v57, %v2559_v38 }
 0x9e4   :  { %v1468_v0 = vadd.f32 %v1467_v63, %v1464_v62 }
 0x9e6   :  { %v1470_v1 = vmul.f32 0.2, %v1468_v0  ;;  %vm1469_vm10 = vcmp.gt.f32.partialorder %v1468_v0, 0.0 }
 0x9e8   :  { %v1471_v11 = vsel %vm1469_vm10, %v1468_v0, %v1470_v1 }
 0x9e9   :  { %v1472_v12 = vadd.f32 %v1471_v11, %v2572_v52 }
 0x9eb   :  { %v1473_v13 = vsel %vm238_vm4, %v1472_v12, -inf }
 0x9f0   :  { %1331 = vrot.lane.b32.xlu2 %v2657_v48, %s2243_s10 }
 0x9f8   :  { %1433 = vrot.lane.b32.xlu2 %v2657_v48, %s2241_s22 }
 0xa00   :  { %1535 = vrot.lane.b32.xlu2 %v2657_v48, %s2244_s24 }
 0xa05   :  { %1576 = vmax.xlane.f32.xlu0 %v1575_v10 }
 0xa0d   :  { %1627 = vmax.xlane.f32.xlu0 %v1626_v56 }
 0xa29   :  { %1474 = vmax.xlane.f32.xlu2 %v1473_v13 }
 0xa3a   :  { %v1373_v14 = vpop.xlane.xlu0 %1372  ;;  %v1526_v38 = vpop.xlane.xlu1 %1525 }
 0xa3b   :  { %v1274_v15 = vpop.xlane.xlu2 %1273  ;;  %v1374_v16 = vsub.f32 %v2696_v31, %v1373_v14  ;;  %v1527_v52 = vsub.f32 %v2693_v30, %v1526_v38 }
 0xa3c   :  { %v1275_v54 = vsub.f32 %v2699_v20, %v1274_v15 }
 0xa3d   :  { %v1375_v18 = vmul.f32 1.442695, %v1374_v16  ;;  %v1528_v27 = vmul.f32 1.442695, %v1527_v52 }
 0xa3e   :  { %v1276_v19 = vmul.f32 1.442695, %v1275_v54 }
 0xa40   :  { %1998 = vpow2.f32 %v1276_v19 }
 0xa41   :  { %2000 = vpow2.f32 %v1375_v18 }
 0xa43   :  { %v1322_v59 = vpop.xlane.xlu2 %1321 }
 0xa44   :  { %v1323_v21 = vsub.f32 %v2708_v23, %v1322_v59 }
 0xa46   :  { %v1999_v61 = vpop.eup %1998  ;;  %v1324_v22 = vmul.f32 1.442695, %v1323_v21 }
 0xa47   :  { %v2001_v58 = vpop.eup %2000  ;;  %v1278_v25 = vsel %vm238_vm4, %v1999_v61, 0.0 }
 0xa48   :  { %2002 = vpow2.f32 %v1324_v22  ;;  %1279 = vadd.xlane.f32.xlu2 %v1278_v25  ;;  %v1377_v26 = vsel %vm238_vm4, %v2001_v58, 0.0 }
 0xa49   :  { %1378 = vadd.xlane.f32.xlu0 %v1377_v26  ;;  %2004 = vpow2.f32 %v1528_v27 }
 0xa4b   :  { %v1424_v28 = vpop.xlane.xlu2 %1423 }
 0xa4c   :  { %v1425_v29 = vsub.f32 %v2713_v5, %v1424_v28  ;;  %v1735_v28 = vld [vmem:[%s2845_s13 + $0x38] sm:$0xff] }
 0xa4d   :  { %v1383_v31 = vpop.permute.xlu0 %1382 }
 0xa4e   :  { %v2003_v32 = vpop.eup %2002  ;;  %v1426_v33 = vmul.f32 1.442695, %v1425_v29  ;;  %1403 = vmatpush.msrb.mxu2 %v1383_v31  ;;  %v1734_v29 = vld [vmem:[%s2845_s13 + $0x30] sm:$0xff]  ;;  %v1733_v31 = vld [vmem:[%s2845_s13 + $0x28] sm:$0xff] }
 0xa4f   :  { %v1326_v30 = vsel %vm238_vm4, %v2003_v32, 0.0  ;;  %v2005_v34 = vpop.eup %2004 }
 0xa50   :  { %2006 = vpow2.f32 %v1426_v33  ;;  %1327 = vadd.xlane.f32.xlu2 %v1326_v30  ;;  %v1530_v36 = vsel %vm238_vm4, %v2005_v34, 0.0  ;;  %v1731_v33 = vld [vmem:[%s2845_s13 + $0x18] sm:$0xff] }
 0xa53   :  { %v1332_v20 = vpop.permute.xlu2 %1331 }
 0xa54   :  { %1352 = vmatpush.msra.mxu1 %v1332_v20  ;;  %v1730_v20 = vld [vmem:[%s2845_s13 + $0x10] sm:$0xff] }
 0xa56   :  { %v2007_v24 = vpop.eup %2006 }
 0xa57   :  { %v1428_v37 = vsel %vm238_vm4, %v2007_v24, 0.0 }
 0xa58   :  { %1531 = vadd.xlane.f32.xlu2 %v1530_v36  ;;  %1429 = vadd.xlane.f32.xlu0 %v1428_v37 }
 0xa5b   :  { %v1434_v4 = vpop.permute.xlu2 %1433 }
 0xa5c   :  { %1454 = vmatpush.msra.mxu0 %v1434_v4 }
 0xa63   :  { %v1536_v23 = vpop.permute.xlu2 %1535 }
 0xa64   :  { %1556 = vmatpush.msra.mxu2 %v1536_v23 }
 0xa78   :  { %v1577_v39 = vpop.xlane.xlu0 %1576 }
 0xa79   :  { %v1578_v3 = vsub.f32 %v2733_v8, %v1577_v39 }
 0xa7b   :  { %v1579_v17 = vmul.f32 1.442695, %v1578_v3 }
 0xa7d   :  { %2008 = vpow2.f32 %v1579_v17  ;;  %v1931_v17 = vld [vmem:[#allocation10] ss:$0 sm:$0xff] }
 0xa80   :  { %v1628_v5 = vpop.xlane.xlu0 %1627 }
 0xa81   :  { %v1629_v7 = vsub.f32 %v2738_v55, %v1628_v5  ;;  %v1638_v55 = vpop.permute.xlu1 %1637 }
 0xa83   :  { %v2009_v41 = vpop.eup %2008  ;;  %v1630_v42 = vmul.f32 1.442695, %v1629_v7 }
 0xa84   :  { %v1581_v43 = vsel %vm238_vm4, %v2009_v41, 0.0 }
 0xa85   :  { %2010 = vpow2.f32 %v1630_v42  ;;  %1582 = vadd.xlane.f32.xlu2 %v1581_v43 }
 0xa8b   :  { %v2011_v40 = vpop.eup %2010 }
 0xa8c   :  { %v1632_v44 = vsel %vm238_vm4, %v2011_v40, 0.0 }
 0xa8d   :  { %1633 = vadd.xlane.f32.xlu0 %v1632_v44 }
 0xa9c   :  { %v1475_v45 = vpop.xlane.xlu2 %1474 }
 0xa9d   :  { %v1476_v46 = vsub.f32 %v1472_v12, %v1475_v45  ;;  %v1704_v45 = vld [vmem:[#allocation12] sm:$0x3] }
 0xa9f   :  { %v1477_v47 = vmul.f32 1.442695, %v1476_v46  ;;  %v1728_v46 = vld [vmem:[%s2845_s13] sm:$0xff] }
 0xaa1   :  { %2012 = vpow2.f32 %v1477_v47  ;;  %1484 = vrot.lane.b32.xlu0 %v2657_v48, %s2242_s23  ;;  %v1767_v47 = vld [vmem:[%s2847_s15 + $0x18] sm:$0xff]  ;;  %s1804_s23 = sshll.u32 %s2849_s17, 4  ;;  %s1805_s23 = int_to_ptr.hbm [resolvable:$true] %s1804_s23 }
 0xaa7   :  { %v2013_v6 = vpop.eup %2012 }
 0xaa8   :  { %v1479_v2 = vsel %vm238_vm4, %v2013_v6, 0.0 }
 0xaa9   :  { %1480 = vadd.xlane.f32.xlu2 %v1479_v2 }
 0xabb   :  { %v1280_v49 = vpop.xlane.xlu2 %1279 }
 0xabc   :  { %2014 = vrcp.f32 %v1280_v49  ;;  %v1379_v50 = vpop.xlane.xlu0 %1378  ;;  %v1765_v49 = vld [vmem:[%s2847_s15 + $0x8] sm:$0xff] }
 0xabd   :  { %2016 = vrcp.f32 %v1379_v50  ;;  %v1764_v50 = vld [vmem:[%s2847_s15] sm:$0xff] }
 0xac1   :  { %1586 = vrot.lane.b32.xlu2 %v2657_v48, %s2246_s12 }
 0xac2   :  { %v2015_v9 = vpop.eup %2014 }
 0xac3   :  { %v2017_v8 = vpop.eup %2016  ;;  %v1282_v51 = vmul.f32 %v2015_v9, %v1999_v61  ;;  %v1328_v10 = vpop.xlane.xlu2 %1327  ;;  %v1932_v9 = vld [vmem:[#allocation13] ss:$0 sm:$0xff] }
 0xac4   :  { %v1381_v53 = vmul.f32 %v2017_v8, %v2001_v58  ;;  %2018 = vrcp.f32 %v1328_v10 }
 0xac5   :  { %1854 = vmatmul.msk.f32.vlgmr.msrb.gmra.mxu0 %vm238_vm4, %v1282_v51 }
 0xac6   :  { %1858 = vmatmul.msk.f32.vlgmr.msrb.gmra.mxu2 %vm238_vm4, %v1381_v53  ;;  %1658 = vmatpush.msrb.mxu0 %v1638_v55  ;;  %v1933_v53 = vld [vmem:[%s2848_s16] ss:$0 sm:$0xff] }
 0xac7   :  { %1751 = vmatpush.msrb.mxu2 %v1735_v28 }
 0xac9   :  { %1752 = vmatpush.msrb.mxu2 %v1734_v29 }
 0xaca   :  { %v2019_v56 = vpop.eup %2018 }
 0xacb   :  { %v1330_v35 = vmul.f32 %v2019_v56, %v2003_v32  ;;  %v1532_v57 = vpop.xlane.xlu2 %1531  ;;  %v1430_v60 = vpop.xlane.xlu0 %1429  ;;  %v1732_v32 = vld [vmem:[%s2845_s13 + $0x20] sm:$0xff]  ;;  %1753 = vmatpush.msrb.mxu2 %v1733_v31 }
 0xacc   :  { %2020 = vrcp.f32 %v1532_v57 }
 0xacd   :  { %2022 = vrcp.f32 %v1430_v60  ;;  %1856 = vmatmul.msk.f32.vlgmr.msra.gmra.mxu1 %vm238_vm4, %v1330_v35  ;;  %1754 = vmatpush.msrb.mxu2 %v1732_v32 }
 0xacf   :  { %1755 = vmatpush.msrb.mxu2 %v1731_v33 }
 0xad1   :  { %1756 = vmatpush.msrb.mxu2 %v1730_v20 }
 0xad2   :  { %v2021_v48 = vpop.eup %2020 }
 0xad3   :  { %v2023_v62 = vpop.eup %2022  ;;  %v1534_v63 = vmul.f32 %v2021_v48, %v2005_v34  ;;  %v1729_v34 = vld [vmem:[%s2845_s13 + $0x8] sm:$0xff] }
 0xad4   :  { %v1432_v0 = vmul.f32 %v2023_v62, %v2007_v24  ;;  %1757 = vmatpush.msrb.mxu2 %v1729_v34 }
 0xad5   :  { %1864 = vmatmul.msk.f32.vlgmr.msra.gmra.mxu2 %vm238_vm4, %v1534_v63 }
 0xad6   :  { %1860 = vmatmul.msk.f32.vlgmr.msra.gmra.mxu0 %vm238_vm4, %v1432_v0  ;;  %1758 = vmatpush.msrb.mxu2 %v1728_v46 }
 0xaf8   :  { %v1583_v14 = vpop.xlane.xlu2 %1582 }
 0xb00   :  { %v1634_v1 = vpop.xlane.xlu0 %1633 }
 0xb01   :  { %2024 = vrcp.f32 %v1634_v1 }
 0xb02   :  { %2026 = vrcp.f32 %v1583_v14 }
 0xb07   :  { %v2025_v11 = vpop.eup %2024 }
 0xb08   :  { %v1636_v12 = vmul.f32 %v2025_v11, %v2011_v40  ;;  %v2027_v16 = vpop.eup %2026 }
 0xb09   :  { %v1585_v18 = vmul.f32 %v2027_v16, %v2009_v41 }
 0xb0a   :  { %1868 = vmatmul.msk.f32.vlgmr.msrb.gmra.mxu0 %vm238_vm4, %v1636_v12 }
 0xb13   :  { %v1485_v13 = vpop.permute.xlu0 %1484 }
 0xb14   :  { %1505 = vmatpush.msrb.mxu1 %v1485_v13 }
 0xb1c   :  { %v1481_v15 = vpop.xlane.xlu2 %1480 }
 0xb1d   :  { %2028 = vrcp.f32 %v1481_v15 }
 0xb23   :  { %v2029_v54 = vpop.eup %2028 }
 0xb24   :  { %v1483_v19 = vmul.f32 %v2029_v54, %v2013_v6  ;;  %v1587_v38 = vpop.permute.xlu2 %1586  ;;  %v1766_v6 = vld [vmem:[%s2847_s15 + $0x10] sm:$0xff] }
 0xb25   :  { %1607 = vmatpush.msrb.mxu3 %v1587_v38 }
 0xb26   :  { %1862 = vmatmul.msk.f32.vlgmr.msrb.gmra.mxu1 %vm238_vm4, %v1483_v19  ;;  %1866 = vmatmul.msk.f32.vlgmr.msrb.gmra.mxu3 %vm238_vm4, %v1585_v18 }
 0xb27   :  { %1787 = vmatpush.msra.mxu3 %v1767_v47 }
 0xb29   :  { %1788 = vmatpush.msra.mxu3 %v1766_v6 }
 0xb2b   :  { %1789 = vmatpush.msra.mxu3 %v1765_v49 }
 0xb2d   :  { %1790 = vmatpush.msra.mxu3 %v1764_v50 }
 0xb42   :  { %v1303_v21 = vpop.f32.mrf.mxu0 }
 0xb49   :  { %v1405_v61 = vpop.f32.mrf.mxu2 }
 0xb4a   :  { %v1354_v59 = vpop.f32.mrf.mxu1 }
 0xb4b   :  { %1664 = vrot.lane.b32.xlu2 %v1354_v59, %s2228_s20 }
 0xb53   :  { %v1456_v52 = vpop.f32.mrf.mxu0  ;;  %1668 = vrot.lane.b32.xlu2 %v1405_v61, %s2247_s14 }
 0xb54   :  { %1672 = vrot.lane.b32.xlu0 %v1456_v52, %s2248_s27 }
 0xb58   :  { %v1558_v22 = vpop.f32.mrf.mxu2 }
 0xb59   :  { %1680 = vrot.lane.b32.xlu1 %v1558_v22, %s2859_s26 }
 0xb87   :  { %v1660_v26 = vpop.f32.mrf.mxu0 }
 0xba3   :  { %v1507_v58 = vpop.f32.mrf.mxu1 }
 0xba4   :  { %1676 = vrot.lane.b32.xlu2 %v1507_v58, %s2250_s28 }
 0xba5   :  { %v1665_v27 = vpop.permute.xlu2 %1664 }
 0xba6   :  { %v1691_v37 = vsel %vm238_vm4, %v1303_v21, %v1665_v27 }
 0xba9   :  { %v1609_v25 = vpop.f32.mrf.mxu3 }
 0xbaa   :  { %1684 = vrot.lane.b32.xlu0 %v1609_v25, %s2858_s8 }
 0xbac   :  { %1688 = vrot.lane.b32.xlu2 %v1660_v26, %s2251_s29 }
 0xbad   :  { %v1669_v30 = vpop.permute.xlu2 %1668 }
 0xbae   :  { %v1692_v4 = vsel %vm659_vm11, %v1691_v37, %v1669_v30 }
 0xbc6   :  { %v1673_v36 = vpop.permute.xlu0 %1672 }
 0xbc7   :  { %v1693_v23 = vsel %vm661_vm12, %v1692_v4, %v1673_v36 }
 0xbcb   :  { %v1681_v3 = vpop.permute.xlu1 %1680 }
 0xbfe   :  { %v1677_v24 = vpop.permute.xlu2 %1676 }
 0xbff   :  { %v1694_v39 = vsel %vm663_vm13, %v1693_v23, %v1677_v24 }
 0xc00   :  { %v1695_v5 = vsel %vm665_vm14, %v1694_v39, %v1681_v3 }
 0xc06   :  { %v1689_v41 = vpop.permute.xlu2 %1688 }
 0xc1c   :  { %v1685_v7 = vpop.permute.xlu0 %1684 }
 0xc1d   :  { %v1696_v42 = vsel %vm667_vm15, %v1695_v5, %v1685_v7 }
 0xc1e   :  { %v1697_v43 = vsel %vm669_vm0, %v1696_v42, %v1689_v41 }
 0xc1f   :  { %v1702_v40 = vadd.f32 %v1931_v17, %v1697_v43 }
 0xc21   :  { %v1703_v44 = vmax.f32 %v1702_v40, 0.0 }
 0xc23   :  { %1723 = vmatpush.msra.mxu1 %v1703_v44 }
 0xc24   :  { %1869 = vmatmul.msk.f32.vlgmr.msra.gmra.mxu1 %vm238_vm4, %v1704_v45  ;;  %vm1795_vm4 = vcmask 25600  }
 0xca1   :  { %v1725_v2 = vpop.f32.mrf.mxu1 }
 0xca2   :  { %1870 = vmatmul.msk.f32.vlgmr.msrb.gmra.mxu2 %vm685_vm1, %v1725_v2 }
 0xd25   :  { %v1760_v8 = vpop.f32.mrf.mxu2 }
 0xd26   :  { %v1761_v51 = vadd.f32 %v1932_v9, %v1760_v8 }
 0xd28   :  { %v1763_v10 = vmax.f32 %v1761_v51, 0.0 }
 0xd2a   :  { %1871 = vmatmul.msk.f32.vlgmr.msra.gmra.mxu3 %vm663_vm13, %v1763_v10 }
 0xdad   :  { %v1792_v55 = vpop.f32.mrf.mxu3 }
 0xdae   :  { %v1793_v56 = vadd.f32 %v1933_v53, %v1792_v55 }
 0xdb0   :  { %1796 = vst.msk [vmem:[#allocation15] sm:$0x3] %vm1795_vm4, %v1793_v56 }
 0xdb1   :  { %1807 = dma.vmem_to_hbm [thread:$0]  %s1803_s2, 32, %s1805_s23, [#allocation4]  }
 0xdb2   :  { %2220 = dma.done.wait [#allocation4], 32  }
 0xdb3   :  { %2221 = vsyncadd [#allocation4], 4294967264 }
 0xdb4   :  { %1812 = vsyncpa [#allocation3], 1 }
 0xdb5   :  { %1813 = vsyncpa [#allocation8], 1 }
 0xdb6   :  { %1814 = vsyncpa [#allocation11], 1 }
 0xdb7   :  { %1815 = vsyncpa [#allocation14], 1 }
 0xdb8   :  { %1816 = vsyncpa [#allocation4], 1 }
 0xdb9   :  { %1817 = vsyncpa [#allocation5], 1 }

</bundles_post_ra>
